<compile_context>
chip_gen: v5e
topology: v5e:2x2
jax: 0.10.0
libtpu: 0.0.40
codegen_flags: <defaults>
</compile_context>

<pallas_src>
import jax
import jax.numpy as jnp
from jax.experimental import pallas as pl
from jax.experimental.pallas import tpu as pltpu

# ----------------------------- model dims -----------------------------------
LATENT_DIM = 2
TRUNK1 = 8               # fc1 out
TRUNK2 = 64              # fc2 out
MDN_IN = 256             # fc3 out / MDN input
HIDDEN_DIM = 50          # MDN hidden (raw)
HIDDEN_PAD = 64          # MDN hidden padded for lane/K alignment
PI_GROUPS = 440          # pi head: (B, 440, 3)
MU_N = 945               # mu / sigma heads: (B, 315, 3)
LOC_N = 375              # loc / concentration heads: (B, 125, 3)
COV_SCALE = 0.8

# 128-aligned padded head widths
PI_PAD = 512             # 440 -> 512 (per mixture component)
MU_PAD = 1024            # 945 -> 1024
LOC_PAD = 384            # 375 -> 384


# ------------------------------ kernel ---------------------------------------
def decoder_mdn_kernel(
    x_ref,
    w1_ref, b1_ref,          # latent -> 8
    w2_ref, b2_ref,          # 8 -> 64
    w3_ref, b3_ref,          # 64 -> 256
    wm_ref, bm_ref,          # 256 -> 64 (padded from 50)   mdn.fc1
    wpi_ref, bpi_ref,        # 64 -> 1536 (3 x 512)         fc_pi (component-blocked)
    wmu_ref, bmu_ref,        # 64 -> 1024                   fc_mu
    wsig_ref, bsig_ref,      # 64 -> 1024                   fc_sigma
    wloc_ref, bloc_ref,      # 64 -> 384                    fc_loc
    wcon_ref, bcon_ref,      # 64 -> 384                    fc_concentration
    pi_ref, mu_ref, sig_ref, loc_ref, con_ref,
):
    x = x_ref[...]                                     # (TB, 2)

    # fc1 (K=2): two VPU broadcast-MACs — K=2 is too ragged to be worth an MXU trip.
    w1 = w1_ref[...]                                   # (2, 8)
    h = jnp.tanh(x[:, 0:1] * w1[0:1, :] + x[:, 1:2] * w1[1:2, :] + b1_ref[...])

    # fc2 / fc3 / mdn.fc1 stay on the MXU (serial chain; fill/drain hides
    # under the head-weight DMAs once the pipeline is warm).
    h = jnp.tanh(jnp.dot(h, w2_ref[...],
                         preferred_element_type=jnp.float32) + b2_ref[...])
    h = jnp.tanh(jnp.dot(h.astype(w3_ref.dtype), w3_ref[...],
                         preferred_element_type=jnp.float32) + b3_ref[...])
    fc = jnp.tanh(jnp.dot(h.astype(wm_ref.dtype), wm_ref[...],
                          preferred_element_type=jnp.float32) + bm_ref[...])
    fc = fc.astype(wpi_ref.dtype)                      # (TB, 64), matmul dtype

    # ---- pi block: dot -> 3-way softmax -> store (no z slab kept alive) ----
    zpi = (jnp.dot(fc, wpi_ref[...], preferred_element_type=jnp.float32)
           + bpi_ref[...])                             # (TB, 1536)
    # Logits are bounded (|logit| <~ 7.3: tanh inputs, 1/sqrt(50) weights), so
    # the max-subtraction is unnecessary: exp cannot overflow in f32.
    e0 = jnp.exp(zpi[:, 0:PI_PAD])
    e1 = jnp.exp(zpi[:, PI_PAD:2 * PI_PAD])
    e2 = jnp.exp(zpi[:, 2 * PI_PAD:3 * PI_PAD])
    inv = pl.reciprocal(e0 + e1 + e2, approx=False)    # 1 recip + 3 muls
    pi_ref[:, 0:PI_PAD] = e0 * inv
    pi_ref[:, PI_PAD:2 * PI_PAD] = e1 * inv
    pi_ref[:, 2 * PI_PAD:3 * PI_PAD] = e2 * inv

    # ---- mu (identity) ----
    mu_ref[...] = (jnp.dot(fc, wmu_ref[...], preferred_element_type=jnp.float32)
                   + bmu_ref[...])

    # ---- sigma (sigmoid * cov_scale) ----
    sig_ref[...] = jax.nn.sigmoid(
        jnp.dot(fc, wsig_ref[...], preferred_element_type=jnp.float32)
        + bsig_ref[...]) * COV_SCALE

    # ---- loc (identity) ----
    loc_ref[...] = (jnp.dot(fc, wloc_ref[...], preferred_element_type=jnp.float32)
                    + bloc_ref[...])

    # ---- concentration (softplus) ----
    con_ref[...] = jax.nn.softplus(
        jnp.dot(fc, wcon_ref[...], preferred_element_type=jnp.float32)
        + bcon_ref[...])


# --------------------------- one-time weight prep -----------------------------
def prepare_decoder_weights(params, *, matmul_dtype=jnp.float32):
    """Pack raw params into the kernel's padded / component-blocked layout.

    Call once and reuse.  `matmul_dtype=jnp.bfloat16` halves head-weight DMA
    and uses the native bf16 MXU, but will exceed the 1e-5 check vs the f32
    reference — keep the default for bit-faithful verification.
    Biases stay f32 (added to the f32 accumulator after the matmul).
    """
    (w1, b1, w2, b2, w3, b3, wm, bm,
     wpi, bpi, wmu, bmu, wsig, bsig, wloc, bloc, wcon, bcon) = params

    def row(b):
        return b.reshape(1, -1).astype(jnp.float32)

    def pad_head(w, b, n_pad):
        # zero-pad output cols to n_pad and input rows 50 -> HIDDEN_PAD
        n = w.shape[1]
        wp = jnp.pad(w, ((0, HIDDEN_PAD - HIDDEN_DIM), (0, n_pad - n)))
        bp = jnp.pad(b, (0, n_pad - n))
        return wp.astype(matmul_dtype), row(bp)

    # mdn.fc1: pad output 50 -> 64 so `fc` is lane-dense and K is tile-friendly.
    wm_p = jnp.pad(wm, ((0, 0), (0, HIDDEN_PAD - HIDDEN_DIM))).astype(matmul_dtype)
    bm_p = row(jnp.pad(bm, (0, HIDDEN_PAD - HIDDEN_DIM)))

    # pi: component c of group g lives at flat column 3*g + c -> make each
    # component a contiguous, 512-wide padded block.
    pi_ws, pi_bs = [], []
    for c in range(3):
        wc, bc = pad_head(wpi[:, c::3], bpi[c::3], PI_PAD)
        pi_ws.append(wc)
        pi_bs.append(bc)
    wpi_p = jnp.concatenate(pi_ws, axis=1)             # (64, 1536)
    bpi_p = jnp.concatenate(pi_bs, axis=1)             # (1, 1536)

    wmu_p, bmu_p = pad_head(wmu, bmu, MU_PAD)
    wsig_p, bsig_p = pad_head(wsig, bsig, MU_PAD)
    wloc_p, bloc_p = pad_head(wloc, bloc, LOC_PAD)
    wcon_p, bcon_p = pad_head(wcon, bcon, LOC_PAD)

    return (w1.astype(jnp.float32), row(b1),
            w2.astype(jnp.float32), row(b2),
            w3.astype(matmul_dtype), row(b3),
            wm_p, bm_p,
            wpi_p, bpi_p, wmu_p, bmu_p, wsig_p, bsig_p,
            wloc_p, bloc_p, wcon_p, bcon_p)


# ------------------------------ wrapper --------------------------------------
def decoder_forward(x, prepped, *, batch_tile=256,
                    vmem_limit_bytes=48 * 1024 * 1024):
    """Pallas Decoder forward (mdn_bool=True path).

    Returns (pi, mu, sigma, loc, conc) with PyTorch shapes
    (B,440,3), (B,315,3), (B,315,3), (B,125,3), (B,125,3).
    """
    B = x.shape[0]
    if B <= batch_tile:
        TB = B
    else:
        # >= 2 grid steps (balanced) so both v7x TensorCores get work; keep
        # the tile 8-aligned for clean sublane blocks.
        half = ((B + 1) // 2 + 7) // 8 * 8
        TB = min(batch_tile, half)
        TB = max(8, (TB // 8) * 8)
    grid = (pl.cdiv(B, TB),)

    def rep_spec(a):  # weights/biases (all 2-D): same (only) block every step
        return pl.BlockSpec(a.shape, lambda i: (0, 0))

    in_specs = [pl.BlockSpec((TB, LATENT_DIM), lambda i: (i, 0))]
    in_specs += [rep_spec(a) for a in prepped]

    out_shape = (
        jax.ShapeDtypeStruct((B, 3 * PI_PAD), jnp.float32),
        jax.ShapeDtypeStruct((B, MU_PAD), jnp.float32),
        jax.ShapeDtypeStruct((B, MU_PAD), jnp.float32),
        jax.ShapeDtypeStruct((B, LOC_PAD), jnp.float32),
        jax.ShapeDtypeStruct((B, LOC_PAD), jnp.float32),
    )
    out_specs = (
        pl.BlockSpec((TB, 3 * PI_PAD), lambda i: (i, 0)),
        pl.BlockSpec((TB, MU_PAD), lambda i: (i, 0)),
        pl.BlockSpec((TB, MU_PAD), lambda i: (i, 0)),
        pl.BlockSpec((TB, LOC_PAD), lambda i: (i, 0)),
        pl.BlockSpec((TB, LOC_PAD), lambda i: (i, 0)),
    )

    pi_o, mu_o, sig_o, loc_o, con_o = pl.pallas_call(
        decoder_mdn_kernel,
        out_shape=out_shape,
        grid=grid,
        in_specs=in_specs,
        out_specs=out_specs,
        compiler_params=pltpu.CompilerParams(
            dimension_semantics=("parallel",),
            vmem_limit_bytes=vmem_limit_bytes),
    )(x, *prepped)

    # Glue: strip padding and reproduce the PyTorch (-1, G, 3) views.
    pi = jnp.stack([pi_o[:, 0:PI_GROUPS],
                    pi_o[:, PI_PAD:PI_PAD + PI_GROUPS],
                    pi_o[:, 2 * PI_PAD:2 * PI_PAD + PI_GROUPS]],
                   axis=-1)                                        # (B, 440, 3)
    mu = mu_o[:, :MU_N].reshape(B, 315, 3)
    sigma = sig_o[:, :MU_N].reshape(B, 315, 3)
    loc = loc_o[:, :LOC_N].reshape(B, 125, 3)
    conc = con_o[:, :LOC_N].reshape(B, 125, 3)
    return pi, mu, sigma, loc, conc


# ------------------------- parameter construction ----------------------------
def init_linear(key, fan_in, fan_out):
    """Deterministic PyTorch-style uniform init; weight stored as (in, out)."""
    kw, kb = jax.random.split(key)
    bound = 1.0 / (fan_in ** 0.5)
    w = jax.random.uniform(kw, (fan_in, fan_out), jnp.float32, -bound, bound)
    b = jax.random.uniform(kb, (fan_out,), jnp.float32, -bound, bound)
    return w, b


def make_params(key):
    keys = jax.random.split(key, 9)
    w1, b1 = init_linear(keys[0], LATENT_DIM, TRUNK1)
    w2, b2 = init_linear(keys[1], TRUNK1, TRUNK2)
    w3, b3 = init_linear(keys[2], TRUNK2, MDN_IN)
    wm, bm = init_linear(keys[3], MDN_IN, HIDDEN_DIM)
    wpi, bpi = init_linear(keys[4], HIDDEN_DIM, 3 * PI_GROUPS)
    wmu, bmu = init_linear(keys[5], HIDDEN_DIM, MU_N)
    wsig, bsig = init_linear(keys[6], HIDDEN_DIM, MU_N)
    wloc, bloc = init_linear(keys[7], HIDDEN_DIM, LOC_N)
    wcon, bcon = init_linear(keys[8], HIDDEN_DIM, LOC_N)
    # TODO(synk): Decoder.fc6 / fc4 / fc5 exist in __init__ but are unused on
    # the mdn_bool=True forward path, so they are not materialized here.
    return (w1, b1, w2, b2, w3, b3, wm, bm,
            wpi, bpi, wmu, bmu, wsig, bsig, wloc, bloc, wcon, bcon)


# ------------------------------ reference ------------------------------------
def decoder_forward_ref(x, params):
    (w1, b1, w2, b2, w3, b3, wm, bm,
     wpi, bpi, wmu, bmu, wsig, bsig, wloc, bloc, wcon, bcon) = params
    h = jnp.tanh(x @ w1 + b1)
    h = jnp.tanh(h @ w2 + b2)
    h = jnp.tanh(h @ w3 + b3)
    fc = jnp.tanh(h @ wm + bm)
    B = x.shape[0]
    pi = jax.nn.softmax((fc @ wpi + bpi).reshape(B, 440, 3), axis=-1)
    mu = (fc @ wmu + bmu).reshape(B, 315, 3)
    sigma = (jax.nn.sigmoid(fc @ wsig + bsig) * COV_SCALE).reshape(B, 315, 3)
    loc = (fc @ wloc + bloc).reshape(B, 125, 3)
    conc = jax.nn.softplus(fc @ wcon + bcon).reshape(B, 125, 3)
    return pi, mu, sigma, loc, conc


# -------------------------------- main ----------------------------------------
if __name__ == "__main__":
    key = jax.random.PRNGKey(0)
    kx, kp = jax.random.split(key)

    B = 8
    x = jax.random.normal(kx, (B, LATENT_DIM), dtype=jnp.float32)
    params = make_params(kp)
    prepped = prepare_decoder_weights(params)   # one-time padded/blocked layout

    outs = decoder_forward(x, prepped)
    outs = jax.block_until_ready(outs)

    refs = decoder_forward_ref(x, params)
    for name, o, r in zip(("pi", "mu", "sigma", "loc", "conc"), outs, refs):
        assert o.shape == r.shape, (name, o.shape, r.shape)
        assert jnp.allclose(o, r, rtol=1e-5, atol=1e-5), name

    print("KERNEL_OK")
</pallas_src>

<mosaic_0001>
module attributes {stable_mosaic.version = 11 : i64} {
  func.func @decoder_mdn_kernel(%arg0: i32, %arg1: memref<8x2xf32, #tpu.memory_space<vmem>>, %arg2: memref<2x8xf32, #tpu.memory_space<vmem>>, %arg3: memref<1x8xf32, #tpu.memory_space<vmem>>, %arg4: memref<8x64xf32, #tpu.memory_space<vmem>>, %arg5: memref<1x64xf32, #tpu.memory_space<vmem>>, %arg6: memref<64x256xf32, #tpu.memory_space<vmem>>, %arg7: memref<1x256xf32, #tpu.memory_space<vmem>>, %arg8: memref<256x64xf32, #tpu.memory_space<vmem>>, %arg9: memref<1x64xf32, #tpu.memory_space<vmem>>, %arg10: memref<64x1536xf32, #tpu.memory_space<vmem>>, %arg11: memref<1x1536xf32, #tpu.memory_space<vmem>>, %arg12: memref<64x1024xf32, #tpu.memory_space<vmem>>, %arg13: memref<1x1024xf32, #tpu.memory_space<vmem>>, %arg14: memref<64x1024xf32, #tpu.memory_space<vmem>>, %arg15: memref<1x1024xf32, #tpu.memory_space<vmem>>, %arg16: memref<64x384xf32, #tpu.memory_space<vmem>>, %arg17: memref<1x384xf32, #tpu.memory_space<vmem>>, %arg18: memref<64x384xf32, #tpu.memory_space<vmem>>, %arg19: memref<1x384xf32, #tpu.memory_space<vmem>>, %arg20: memref<8x1536xf32, #tpu.memory_space<vmem>>, %arg21: memref<8x1024xf32, #tpu.memory_space<vmem>>, %arg22: memref<8x1024xf32, #tpu.memory_space<vmem>>, %arg23: memref<8x384xf32, #tpu.memory_space<vmem>>, %arg24: memref<8x384xf32, #tpu.memory_space<vmem>>) attributes {dimension_semantics = [#tpu.dimension_semantics<parallel>], iteration_bounds = array<i64: 1>, scalar_prefetch = 0 : i64, scratch_operands = 0 : i64, tpu.core_type = #tpu.core_type<tc>, window_params = [{transform_indices = @transform_0, window_bounds = array<i64: 8, 2>}, {pipeline_mode = #tpu.pipeline_mode<synchronous>, transform_indices = @transform_1, window_bounds = array<i64: 2, 8>}, {pipeline_mode = #tpu.pipeline_mode<synchronous>, transform_indices = @transform_2, window_bounds = array<i64: 1, 8>}, {pipeline_mode = #tpu.pipeline_mode<synchronous>, transform_indices = @transform_3, window_bounds = array<i64: 8, 64>}, {pipeline_mode = #tpu.pipeline_mode<synchronous>, transform_indices = @transform_4, window_bounds = array<i64: 1, 64>}, {pipeline_mode = #tpu.pipeline_mode<synchronous>, transform_indices = @transform_5, window_bounds = array<i64: 64, 256>}, {pipeline_mode = #tpu.pipeline_mode<synchronous>, transform_indices = @transform_6, window_bounds = array<i64: 1, 256>}, {pipeline_mode = #tpu.pipeline_mode<synchronous>, transform_indices = @transform_7, window_bounds = array<i64: 256, 64>}, {pipeline_mode = #tpu.pipeline_mode<synchronous>, transform_indices = @transform_8, window_bounds = array<i64: 1, 64>}, {pipeline_mode = #tpu.pipeline_mode<synchronous>, transform_indices = @transform_9, window_bounds = array<i64: 64, 1536>}, {pipeline_mode = #tpu.pipeline_mode<synchronous>, transform_indices = @transform_10, window_bounds = array<i64: 1, 1536>}, {pipeline_mode = #tpu.pipeline_mode<synchronous>, transform_indices = @transform_11, window_bounds = array<i64: 64, 1024>}, {pipeline_mode = #tpu.pipeline_mode<synchronous>, transform_indices = @transform_12, window_bounds = array<i64: 1, 1024>}, {pipeline_mode = #tpu.pipeline_mode<synchronous>, transform_indices = @transform_13, window_bounds = array<i64: 64, 1024>}, {pipeline_mode = #tpu.pipeline_mode<synchronous>, transform_indices = @transform_14, window_bounds = array<i64: 1, 1024>}, {pipeline_mode = #tpu.pipeline_mode<synchronous>, transform_indices = @transform_15, window_bounds = array<i64: 64, 384>}, {pipeline_mode = #tpu.pipeline_mode<synchronous>, transform_indices = @transform_16, window_bounds = array<i64: 1, 384>}, {pipeline_mode = #tpu.pipeline_mode<synchronous>, transform_indices = @transform_17, window_bounds = array<i64: 64, 384>}, {pipeline_mode = #tpu.pipeline_mode<synchronous>, transform_indices = @transform_18, window_bounds = array<i64: 1, 384>}, {transform_indices = @transform_19, window_bounds = array<i64: 8, 1536>}, {transform_indices = @transform_20, window_bounds = array<i64: 8, 1024>}, {transform_indices = @transform_21, window_bounds = array<i64: 8, 1024>}, {transform_indices = @transform_22, window_bounds = array<i64: 8, 384>}, {transform_indices = @transform_23, window_bounds = array<i64: 8, 384>}]} {
    %c0 = arith.constant 0 : index
    %c0_0 = arith.constant 0 : index
    %0 = vector.load %arg1[%c0, %c0_0] : memref<8x2xf32, #tpu.memory_space<vmem>>, vector<8x2xf32>
    %c0_1 = arith.constant 0 : index
    %c0_2 = arith.constant 0 : index
    %1 = vector.load %arg2[%c0_1, %c0_2] : memref<2x8xf32, #tpu.memory_space<vmem>>, vector<2x8xf32>
    %2 = vector.extract_strided_slice %0 {offsets = [0, 0], sizes = [8, 1], strides = [1, 1]} : vector<8x2xf32> to vector<8x1xf32>
    %3 = vector.extract_strided_slice %1 {offsets = [0, 0], sizes = [1, 8], strides = [1, 1]} : vector<2x8xf32> to vector<1x8xf32>
    %4 = vector.broadcast %2 : vector<8x1xf32> to vector<8x8xf32>
    %5 = vector.broadcast %3 : vector<1x8xf32> to vector<8x8xf32>
    %6 = arith.mulf %4, %5 : vector<8x8xf32>
    %7 = vector.extract_strided_slice %0 {offsets = [0, 1], sizes = [8, 1], strides = [1, 1]} : vector<8x2xf32> to vector<8x1xf32>
    %8 = vector.extract_strided_slice %1 {offsets = [1, 0], sizes = [1, 8], strides = [1, 1]} : vector<2x8xf32> to vector<1x8xf32>
    %9 = vector.broadcast %7 : vector<8x1xf32> to vector<8x8xf32>
    %10 = vector.broadcast %8 : vector<1x8xf32> to vector<8x8xf32>
    %11 = arith.mulf %9, %10 : vector<8x8xf32>
    %12 = arith.addf %6, %11 : vector<8x8xf32>
    %c0_3 = arith.constant 0 : index
    %c0_4 = arith.constant 0 : index
    %13 = vector.load %arg3[%c0_3, %c0_4] : memref<1x8xf32, #tpu.memory_space<vmem>>, vector<1x8xf32>
    %14 = vector.broadcast %13 : vector<1x8xf32> to vector<8x8xf32>
    %15 = arith.addf %12, %14 : vector<8x8xf32>
    %16 = math.tanh %15 : vector<8x8xf32>
    %c0_5 = arith.constant 0 : index
    %c0_6 = arith.constant 0 : index
    %17 = vector.load %arg4[%c0_5, %c0_6] : memref<8x64xf32, #tpu.memory_space<vmem>>, vector<8x64xf32>
    %cst = arith.constant dense<0.000000e+00> : vector<8x64xf32>
    %18 = tpu.matmul %16, %17, %cst {dimension_numbers = #tpu.dot_dimension_numbers<[1], [0], [0], [1], [0, 0, 1, 1], [], []>} : vector<8x8xf32>, vector<8x64xf32>, vector<8x64xf32> -> vector<8x64xf32>
    %c0_7 = arith.constant 0 : index
    %c0_8 = arith.constant 0 : index
    %19 = vector.load %arg5[%c0_7, %c0_8] : memref<1x64xf32, #tpu.memory_space<vmem>>, vector<1x64xf32>
    %20 = vector.broadcast %19 : vector<1x64xf32> to vector<8x64xf32>
    %21 = arith.addf %18, %20 : vector<8x64xf32>
    %22 = math.tanh %21 : vector<8x64xf32>
    %c0_9 = arith.constant 0 : index
    %c0_10 = arith.constant 0 : index
    %23 = vector.load %arg6[%c0_9, %c0_10] : memref<64x256xf32, #tpu.memory_space<vmem>>, vector<64x256xf32>
    %cst_11 = arith.constant dense<0.000000e+00> : vector<8x256xf32>
    %24 = tpu.matmul %22, %23, %cst_11 {dimension_numbers = #tpu.dot_dimension_numbers<[1], [0], [0], [1], [0, 0, 1, 1], [], []>} : vector<8x64xf32>, vector<64x256xf32>, vector<8x256xf32> -> vector<8x256xf32>
    %c0_12 = arith.constant 0 : index
    %c0_13 = arith.constant 0 : index
    %25 = vector.load %arg7[%c0_12, %c0_13] : memref<1x256xf32, #tpu.memory_space<vmem>>, vector<1x256xf32>
    %26 = vector.broadcast %25 : vector<1x256xf32> to vector<8x256xf32>
    %27 = arith.addf %24, %26 : vector<8x256xf32>
    %28 = math.tanh %27 : vector<8x256xf32>
    %c0_14 = arith.constant 0 : index
    %c0_15 = arith.constant 0 : index
    %29 = vector.load %arg8[%c0_14, %c0_15] : memref<256x64xf32, #tpu.memory_space<vmem>>, vector<256x64xf32>
    %cst_16 = arith.constant dense<0.000000e+00> : vector<8x64xf32>
    %30 = tpu.matmul %28, %29, %cst_16 {dimension_numbers = #tpu.dot_dimension_numbers<[1], [0], [0], [1], [0, 0, 1, 1], [], []>} : vector<8x256xf32>, vector<256x64xf32>, vector<8x64xf32> -> vector<8x64xf32>
    %c0_17 = arith.constant 0 : index
    %c0_18 = arith.constant 0 : index
    %31 = vector.load %arg9[%c0_17, %c0_18] : memref<1x64xf32, #tpu.memory_space<vmem>>, vector<1x64xf32>
    %32 = vector.broadcast %31 : vector<1x64xf32> to vector<8x64xf32>
    %33 = arith.addf %30, %32 : vector<8x64xf32>
    %34 = math.tanh %33 : vector<8x64xf32>
    %c0_19 = arith.constant 0 : index
    %c0_20 = arith.constant 0 : index
    %35 = vector.load %arg10[%c0_19, %c0_20] : memref<64x1536xf32, #tpu.memory_space<vmem>>, vector<64x1536xf32>
    %cst_21 = arith.constant dense<0.000000e+00> : vector<8x1536xf32>
    %36 = tpu.matmul %34, %35, %cst_21 {dimension_numbers = #tpu.dot_dimension_numbers<[1], [0], [0], [1], [0, 0, 1, 1], [], []>} : vector<8x64xf32>, vector<64x1536xf32>, vector<8x1536xf32> -> vector<8x1536xf32>
    %c0_22 = arith.constant 0 : index
    %c0_23 = arith.constant 0 : index
    %37 = vector.load %arg11[%c0_22, %c0_23] : memref<1x1536xf32, #tpu.memory_space<vmem>>, vector<1x1536xf32>
    %38 = vector.broadcast %37 : vector<1x1536xf32> to vector<8x1536xf32>
    %39 = arith.addf %36, %38 : vector<8x1536xf32>
    %40 = vector.extract_strided_slice %39 {offsets = [0, 0], sizes = [8, 512], strides = [1, 1]} : vector<8x1536xf32> to vector<8x512xf32>
    %41 = math.exp %40 : vector<8x512xf32>
    %42 = vector.extract_strided_slice %39 {offsets = [0, 512], sizes = [8, 512], strides = [1, 1]} : vector<8x1536xf32> to vector<8x512xf32>
    %43 = math.exp %42 : vector<8x512xf32>
    %44 = vector.extract_strided_slice %39 {offsets = [0, 1024], sizes = [8, 512], strides = [1, 1]} : vector<8x1536xf32> to vector<8x512xf32>
    %45 = math.exp %44 : vector<8x512xf32>
    %46 = arith.addf %41, %43 : vector<8x512xf32>
    %47 = arith.addf %46, %45 : vector<8x512xf32>
    %48 = tpu.reciprocal %47 : vector<8x512xf32> -> vector<8x512xf32>
    %49 = arith.mulf %41, %48 : vector<8x512xf32>
    %c0_24 = arith.constant 0 : index
    %c0_25 = arith.constant 0 : index
    %50 = vector.load %arg20[%c0_24, %c0_25] : memref<8x1536xf32, #tpu.memory_space<vmem>>, vector<8x512xf32>
    tpu.vector_store %arg20[%c0_24, %c0_25], %49 {strides = array<i32>} : memref<8x1536xf32, #tpu.memory_space<vmem>>, vector<8x512xf32>,
    %51 = arith.mulf %43, %48 : vector<8x512xf32>
    %c0_26 = arith.constant 0 : index
    %c512 = arith.constant 512 : index
    %52 = vector.load %arg20[%c0_26, %c512] : memref<8x1536xf32, #tpu.memory_space<vmem>>, vector<8x512xf32>
    tpu.vector_store %arg20[%c0_26, %c512], %51 {strides = array<i32>} : memref<8x1536xf32, #tpu.memory_space<vmem>>, vector<8x512xf32>,
    %53 = arith.mulf %45, %48 : vector<8x512xf32>
    %c0_27 = arith.constant 0 : index
    %c1024 = arith.constant 1024 : index
    %54 = vector.load %arg20[%c0_27, %c1024] : memref<8x1536xf32, #tpu.memory_space<vmem>>, vector<8x512xf32>
    tpu.vector_store %arg20[%c0_27, %c1024], %53 {strides = array<i32>} : memref<8x1536xf32, #tpu.memory_space<vmem>>, vector<8x512xf32>,
    %c0_28 = arith.constant 0 : index
    %c0_29 = arith.constant 0 : index
    %55 = vector.load %arg12[%c0_28, %c0_29] : memref<64x1024xf32, #tpu.memory_space<vmem>>, vector<64x1024xf32>
    %cst_30 = arith.constant dense<0.000000e+00> : vector<8x1024xf32>
    %56 = tpu.matmul %34, %55, %cst_30 {dimension_numbers = #tpu.dot_dimension_numbers<[1], [0], [0], [1], [0, 0, 1, 1], [], []>} : vector<8x64xf32>, vector<64x1024xf32>, vector<8x1024xf32> -> vector<8x1024xf32>
    %c0_31 = arith.constant 0 : index
    %c0_32 = arith.constant 0 : index
    %57 = vector.load %arg13[%c0_31, %c0_32] : memref<1x1024xf32, #tpu.memory_space<vmem>>, vector<1x1024xf32>
    %58 = vector.broadcast %57 : vector<1x1024xf32> to vector<8x1024xf32>
    %59 = arith.addf %56, %58 : vector<8x1024xf32>
    %c0_33 = arith.constant 0 : index
    %c0_34 = arith.constant 0 : index
    %60 = vector.load %arg21[%c0_33, %c0_34] : memref<8x1024xf32, #tpu.memory_space<vmem>>, vector<8x1024xf32>
    tpu.vector_store %arg21[%c0_33, %c0_34], %59 {strides = array<i32>} : memref<8x1024xf32, #tpu.memory_space<vmem>>, vector<8x1024xf32>,
    %c0_35 = arith.constant 0 : index
    %c0_36 = arith.constant 0 : index
    %61 = vector.load %arg14[%c0_35, %c0_36] : memref<64x1024xf32, #tpu.memory_space<vmem>>, vector<64x1024xf32>
    %cst_37 = arith.constant dense<0.000000e+00> : vector<8x1024xf32>
    %62 = tpu.matmul %34, %61, %cst_37 {dimension_numbers = #tpu.dot_dimension_numbers<[1], [0], [0], [1], [0, 0, 1, 1], [], []>} : vector<8x64xf32>, vector<64x1024xf32>, vector<8x1024xf32> -> vector<8x1024xf32>
    %c0_38 = arith.constant 0 : index
    %c0_39 = arith.constant 0 : index
    %63 = vector.load %arg15[%c0_38, %c0_39] : memref<1x1024xf32, #tpu.memory_space<vmem>>, vector<1x1024xf32>
    %64 = vector.broadcast %63 : vector<1x1024xf32> to vector<8x1024xf32>
    %65 = arith.addf %62, %64 : vector<8x1024xf32>
    %66 = arith.negf %65 : vector<8x1024xf32>
    %67 = math.exp %66 : vector<8x1024xf32>
    %cst_40 = arith.constant 1.000000e+00 : f32
    %68 = vector.broadcast %cst_40 : f32 to vector<8x1024xf32>
    %69 = arith.addf %68, %67 : vector<8x1024xf32>
    %70 = arith.divf %68, %69 : vector<8x1024xf32>
    %cst_41 = arith.constant 8.000000e-01 : f32
    %71 = vector.broadcast %cst_41 : f32 to vector<8x1024xf32>
    %72 = arith.mulf %70, %71 : vector<8x1024xf32>
    %c0_42 = arith.constant 0 : index
    %c0_43 = arith.constant 0 : index
    %73 = vector.load %arg22[%c0_42, %c0_43] : memref<8x1024xf32, #tpu.memory_space<vmem>>, vector<8x1024xf32>
    tpu.vector_store %arg22[%c0_42, %c0_43], %72 {strides = array<i32>} : memref<8x1024xf32, #tpu.memory_space<vmem>>, vector<8x1024xf32>,
    %c0_44 = arith.constant 0 : index
    %c0_45 = arith.constant 0 : index
    %74 = vector.load %arg16[%c0_44, %c0_45] : memref<64x384xf32, #tpu.memory_space<vmem>>, vector<64x384xf32>
    %cst_46 = arith.constant dense<0.000000e+00> : vector<8x384xf32>
    %75 = tpu.matmul %34, %74, %cst_46 {dimension_numbers = #tpu.dot_dimension_numbers<[1], [0], [0], [1], [0, 0, 1, 1], [], []>} : vector<8x64xf32>, vector<64x384xf32>, vector<8x384xf32> -> vector<8x384xf32>
    %c0_47 = arith.constant 0 : index
    %c0_48 = arith.constant 0 : index
    %76 = vector.load %arg17[%c0_47, %c0_48] : memref<1x384xf32, #tpu.memory_space<vmem>>, vector<1x384xf32>
    %77 = vector.broadcast %76 : vector<1x384xf32> to vector<8x384xf32>
    %78 = arith.addf %75, %77 : vector<8x384xf32>
    %c0_49 = arith.constant 0 : index
    %c0_50 = arith.constant 0 : index
    %79 = vector.load %arg23[%c0_49, %c0_50] : memref<8x384xf32, #tpu.memory_space<vmem>>, vector<8x384xf32>
    tpu.vector_store %arg23[%c0_49, %c0_50], %78 {strides = array<i32>} : memref<8x384xf32, #tpu.memory_space<vmem>>, vector<8x384xf32>,
    %c0_51 = arith.constant 0 : index
    %c0_52 = arith.constant 0 : index
    %80 = vector.load %arg18[%c0_51, %c0_52] : memref<64x384xf32, #tpu.memory_space<vmem>>, vector<64x384xf32>
    %cst_53 = arith.constant dense<0.000000e+00> : vector<8x384xf32>
    %81 = tpu.matmul %34, %80, %cst_53 {dimension_numbers = #tpu.dot_dimension_numbers<[1], [0], [0], [1], [0, 0, 1, 1], [], []>} : vector<8x64xf32>, vector<64x384xf32>, vector<8x384xf32> -> vector<8x384xf32>
    %c0_54 = arith.constant 0 : index
    %c0_55 = arith.constant 0 : index
    %82 = vector.load %arg19[%c0_54, %c0_55] : memref<1x384xf32, #tpu.memory_space<vmem>>, vector<1x384xf32>
    %83 = vector.broadcast %82 : vector<1x384xf32> to vector<8x384xf32>
    %84 = arith.addf %81, %83 : vector<8x384xf32>
    %cst_56 = arith.constant 0.000000e+00 : f32
    %85 = vector.broadcast %cst_56 : f32 to vector<8x384xf32>
    %86 = arith.maximumf %84, %85 : vector<8x384xf32>
    %87 = vector.broadcast %cst_56 : f32 to vector<8x384xf32>
    %88 = arith.subf %84, %87 : vector<8x384xf32>
    %89 = arith.cmpf one, %88, %88 : vector<8x384xf32>
    %90 = vector.broadcast %cst_56 : f32 to vector<8x384xf32>
    %91 = arith.addf %84, %90 : vector<8x384xf32>
    %92 = math.absf %88 : vector<8x384xf32>
    %cst_57 = arith.constant 0.000000e+00 : f32
    %93 = vector.broadcast %cst_57 : f32 to vector<8x384xf32>
    %94 = arith.subf %93, %92 : vector<8x384xf32>
    %95 = math.exp %94 : vector<8x384xf32>
    %96 = math.log1p %95 : vector<8x384xf32>
    %97 = arith.addf %86, %96 : vector<8x384xf32>
    %98 = arith.select %89, %91, %97 : vector<8x384xi1>, vector<8x384xf32>
    %c0_58 = arith.constant 0 : index
    %c0_59 = arith.constant 0 : index
    %99 = vector.load %arg24[%c0_58, %c0_59] : memref<8x384xf32, #tpu.memory_space<vmem>>, vector<8x384xf32>
    tpu.vector_store %arg24[%c0_58, %c0_59], %98 {strides = array<i32>} : memref<8x384xf32, #tpu.memory_space<vmem>>, vector<8x384xf32>,
    return
  }
  func.func @transform_0(%arg0: i32) -> (i32, i32) {
    %c0_i32 = arith.constant 0 : i32
    %c0_i32_0 = arith.constant 0 : i32
    return %arg0, %c0_i32 : i32, i32
  }
  func.func @transform_1(%arg0: i32) -> (i32, i32) {
    %c0_i32 = arith.constant 0 : i32
    %c0_i32_0 = arith.constant 0 : i32
    %c0_i32_1 = arith.constant 0 : i32
    return %c0_i32, %c0_i32_0 : i32, i32
  }
  func.func @transform_2(%arg0: i32) -> (i32, i32) {
    %c0_i32 = arith.constant 0 : i32
    %c0_i32_0 = arith.constant 0 : i32
    %c0_i32_1 = arith.constant 0 : i32
    return %c0_i32, %c0_i32_0 : i32, i32
  }
  func.func @transform_3(%arg0: i32) -> (i32, i32) {
    %c0_i32 = arith.constant 0 : i32
    %c0_i32_0 = arith.constant 0 : i32
    %c0_i32_1 = arith.constant 0 : i32
    return %c0_i32, %c0_i32_0 : i32, i32
  }
  func.func @transform_4(%arg0: i32) -> (i32, i32) {
    %c0_i32 = arith.constant 0 : i32
    %c0_i32_0 = arith.constant 0 : i32
    %c0_i32_1 = arith.constant 0 : i32
    return %c0_i32, %c0_i32_0 : i32, i32
  }
  func.func @transform_5(%arg0: i32) -> (i32, i32) {
    %c0_i32 = arith.constant 0 : i32
    %c0_i32_0 = arith.constant 0 : i32
    %c0_i32_1 = arith.constant 0 : i32
    return %c0_i32, %c0_i32_0 : i32, i32
  }
  func.func @transform_6(%arg0: i32) -> (i32, i32) {
    %c0_i32 = arith.constant 0 : i32
    %c0_i32_0 = arith.constant 0 : i32
    %c0_i32_1 = arith.constant 0 : i32
    return %c0_i32, %c0_i32_0 : i32, i32
  }
  func.func @transform_7(%arg0: i32) -> (i32, i32) {
    %c0_i32 = arith.constant 0 : i32
    %c0_i32_0 = arith.constant 0 : i32
    %c0_i32_1 = arith.constant 0 : i32
    return %c0_i32, %c0_i32_0 : i32, i32
  }
  func.func @transform_8(%arg0: i32) -> (i32, i32) {
    %c0_i32 = arith.constant 0 : i32
    %c0_i32_0 = arith.constant 0 : i32
    %c0_i32_1 = arith.constant 0 : i32
    return %c0_i32, %c0_i32_0 : i32, i32
  }
  func.func @transform_9(%arg0: i32) -> (i32, i32) {
    %c0_i32 = arith.constant 0 : i32
    %c0_i32_0 = arith.constant 0 : i32
    %c0_i32_1 = arith.constant 0 : i32
    return %c0_i32, %c0_i32_0 : i32, i32
  }
  func.func @transform_10(%arg0: i32) -> (i32, i32) {
    %c0_i32 = arith.constant 0 : i32
    %c0_i32_0 = arith.constant 0 : i32
    %c0_i32_1 = arith.constant 0 : i32
    return %c0_i32, %c0_i32_0 : i32, i32
  }
  func.func @transform_11(%arg0: i32) -> (i32, i32) {
    %c0_i32 = arith.constant 0 : i32
    %c0_i32_0 = arith.constant 0 : i32
    %c0_i32_1 = arith.constant 0 : i32
    return %c0_i32, %c0_i32_0 : i32, i32
  }
  func.func @transform_12(%arg0: i32) -> (i32, i32) {
    %c0_i32 = arith.constant 0 : i32
    %c0_i32_0 = arith.constant 0 : i32
    %c0_i32_1 = arith.constant 0 : i32
    return %c0_i32, %c0_i32_0 : i32, i32
  }
  func.func @transform_13(%arg0: i32) -> (i32, i32) {
    %c0_i32 = arith.constant 0 : i32
    %c0_i32_0 = arith.constant 0 : i32
    %c0_i32_1 = arith.constant 0 : i32
    return %c0_i32, %c0_i32_0 : i32, i32
  }
  func.func @transform_14(%arg0: i32) -> (i32, i32) {
    %c0_i32 = arith.constant 0 : i32
    %c0_i32_0 = arith.constant 0 : i32
    %c0_i32_1 = arith.constant 0 : i32
    return %c0_i32, %c0_i32_0 : i32, i32
  }
  func.func @transform_15(%arg0: i32) -> (i32, i32) {
    %c0_i32 = arith.constant 0 : i32
    %c0_i32_0 = arith.constant 0 : i32
    %c0_i32_1 = arith.constant 0 : i32
    return %c0_i32, %c0_i32_0 : i32, i32
  }
  func.func @transform_16(%arg0: i32) -> (i32, i32) {
    %c0_i32 = arith.constant 0 : i32
    %c0_i32_0 = arith.constant 0 : i32
    %c0_i32_1 = arith.constant 0 : i32
    return %c0_i32, %c0_i32_0 : i32, i32
  }
  func.func @transform_17(%arg0: i32) -> (i32, i32) {
    %c0_i32 = arith.constant 0 : i32
    %c0_i32_0 = arith.constant 0 : i32
    %c0_i32_1 = arith.constant 0 : i32
    return %c0_i32, %c0_i32_0 : i32, i32
  }
  func.func @transform_18(%arg0: i32) -> (i32, i32) {
    %c0_i32 = arith.constant 0 : i32
    %c0_i32_0 = arith.constant 0 : i32
    %c0_i32_1 = arith.constant 0 : i32
    return %c0_i32, %c0_i32_0 : i32, i32
  }
  func.func @transform_19(%arg0: i32) -> (i32, i32) {
    %c0_i32 = arith.constant 0 : i32
    %c0_i32_0 = arith.constant 0 : i32
    return %arg0, %c0_i32 : i32, i32
  }
  func.func @transform_20(%arg0: i32) -> (i32, i32) {
    %c0_i32 = arith.constant 0 : i32
    %c0_i32_0 = arith.constant 0 : i32
    return %arg0, %c0_i32 : i32, i32
  }
  func.func @transform_21(%arg0: i32) -> (i32, i32) {
    %c0_i32 = arith.constant 0 : i32
    %c0_i32_0 = arith.constant 0 : i32
    return %arg0, %c0_i32 : i32, i32
  }
  func.func @transform_22(%arg0: i32) -> (i32, i32) {
    %c0_i32 = arith.constant 0 : i32
    %c0_i32_0 = arith.constant 0 : i32
    return %arg0, %c0_i32 : i32, i32
  }
  func.func @transform_23(%arg0: i32) -> (i32, i32) {
    %c0_i32 = arith.constant 0 : i32
    %c0_i32_0 = arith.constant 0 : i32
    return %arg0, %c0_i32 : i32, i32
  }
}

</mosaic_0001>

<bundles_post_ra>
// kernel: tpu_custom_call.1
= control target key start
LH: loop header
LB: loop body
LE: loop exit
PB: predicated region body
PF: predicated region fallthrough
CT: control target
= control target key end

     0   :  { %s3128_s0 = inlined_call_operand.vmem [shape: f32[8,2], index: 0, kind: input, shape index: {}]   ;;  %s3129_s1 = inlined_call_operand.hbm [shape: f32[2,8], index: 1, kind: input, shape index: {}]   ;;  %s3130_s2 = inlined_call_operand.vmem [shape: f32[1,8], index: 2, kind: input, shape index: {}]   ;;  %s3131_s3 = inlined_call_operand.hbm [shape: f32[8,64], index: 3, kind: input, shape index: {}]   ;;  %s3132_s4 = inlined_call_operand.hbm [shape: f32[1,64], index: 4, kind: input, shape index: {}]   ;;  %s3133_s5 = inlined_call_operand.hbm [shape: f32[64,256], index: 5, kind: input, shape index: {}]   ;;  %s3134_s6 = inlined_call_operand.hbm [shape: f32[1,256], index: 6, kind: input, shape index: {}]   ;;  %s3135_s7 = inlined_call_operand.vmem [shape: f32[256,64], index: 7, kind: input, shape index: {}]   ;;  %s3136_s8 = inlined_call_operand.hbm [shape: f32[1,64], index: 8, kind: input, shape index: {}]   ;;  %s3137_s9 = inlined_call_operand.hbm [shape: f32[64,1536], index: 9, kind: input, shape index: {}]   ;;  %s3138_s10 = inlined_call_operand.vmem [shape: f32[1,1536], index: 10, kind: input, shape index: {}]   ;;  %s3139_s11 = inlined_call_operand.hbm [shape: f32[64,1024], index: 11, kind: input, shape index: {}]   ;;  %s3140_s12 = inlined_call_operand.hbm [shape: f32[1,1024], index: 12, kind: input, shape index: {}]   ;;  %s3141_s13 = inlined_call_operand.hbm [shape: f32[64,1024], index: 13, kind: input, shape index: {}]   ;;  %s3142_s14 = inlined_call_operand.hbm [shape: f32[1,1024], index: 14, kind: input, shape index: {}]   ;;  %s3143_s15 = inlined_call_operand.vmem [shape: f32[64,384], index: 15, kind: input, shape index: {}]   ;;  %s3144_s16 = inlined_call_operand.vmem [shape: f32[1,384], index: 16, kind: input, shape index: {}]   ;;  %s3145_s17 = inlined_call_operand.vmem [shape: f32[64,384], index: 17, kind: input, shape index: {}]   ;;  %s3146_s18 = inlined_call_operand.vmem [shape: f32[1,384], index: 18, kind: input, shape index: {}]   ;;  %s3147_s19 = inlined_call_operand.hbm [shape: f32[8,1536], index: 19, kind: output, shape index: {0}]   ;;  %s3148_s20 = inlined_call_operand.hbm [shape: f32[8,1024], index: 20, kind: output, shape index: {1}]   ;;  %s3149_s21 = inlined_call_operand.hbm [shape: f32[8,1024], index: 21, kind: output, shape index: {2}]   ;;  %s3150_s22 = inlined_call_operand.hbm [shape: f32[8,384], index: 22, kind: output, shape index: {3}]   ;;  %s3151_s23 = inlined_call_operand.hbm [shape: f32[8,384], index: 23, kind: output, shape index: {4}]  }
   0x1   :  { %3153 = sst [smem:[#allocation36_spill]] %s3128_s0 }
   0x2   :  { %3154 = sst [smem:[#allocation37_spill]] %s3129_s1 }
   0x3   :  { %3155 = sst [smem:[#allocation38_spill]] %s3130_s2 }
   0x4   :  { %3156 = sst [smem:[#allocation39_spill]] %s3131_s3 }
   0x5   :  { %3157 = sst [smem:[#allocation40_spill]] %s3132_s4 }
   0x6   :  { %3158 = sst [smem:[#allocation41_spill]] %s3133_s5 }
   0x7   :  { %3159 = sst [smem:[#allocation42_spill]] %s3134_s6 }
   0x8   :  { %3160 = sst [smem:[#allocation43_spill]] %s3135_s7 }
   0x9   :  { %3161 = sst [smem:[#allocation44_spill]] %s3149_s21 }
   0xa   :  { %3162 = sst [smem:[#allocation45_spill]] %s3151_s23 }
   0xb   :  { %29 = vsyncpa [#allocation3], 0 }
   0xc   :  { %30 = vsyncpa [#allocation6], 0 }
   0xd   :  { %31 = vsyncpa [#allocation9], 0 }
   0xe   :  { %32 = vsyncpa [#allocation12], 0 }
   0xf   :  { %33 = vsyncpa [#allocation15], 0 }
  0x10   :  { %34 = vsyncpa [#allocation18], 0 }
  0x11   :  { %35 = vsyncpa [#allocation4], 0 }
  0x12   :  { %36 = vsyncpa [#allocation22], 0  ;;  %s3163_s24 = sld [smem:[#allocation39_spill]] }
  0x18   :  { %s58_s25 = sshll.u32 %s3163_s24, 4  ;;  %s59_s25 = int_to_ptr.hbm [resolvable:$true] %s58_s25 }
  0x19   :  { %37 = vsyncpa [#allocation25], 0  ;;  %s2453_s5 = smov [#allocation5]   ;;  %s3164_s6 = sld [smem:[#allocation41_spill]] }
  0x1a   :  { %s60_s1 = sshll.u32 %s2453_s5, 4  ;;  %s2454_s7 = smov [#allocation8]   ;;  %s61_s1 = int_to_ptr.vmem [resolvable:$true] %s60_s1 }
  0x1b   :  { %63 = dma.hbm_to_vmem [thread:$0]  %s59_s25, 128, %s61_s1, [#allocation6]  }
  0x1c   :  { %s81_s28 = sshll.u32 %s2454_s7, 4  ;;  %s2455_s29 = smov 256   ;;  %s82_s28 = int_to_ptr.vmem [resolvable:$true] %s81_s28 }
  0x1d   :  { %s2456_s3 = smov 16   ;;  %s106_s30 = sshll.u32 %s3136_s8, 4  ;;  %s107_s30 = int_to_ptr.hbm [resolvable:$true] %s106_s30 }
  0x1e   :  { %s2457_s24 = smov [#allocation11]   ;;  %s131_s26 = sshll.u32 %s3139_s11, 4  ;;  %s132_s26 = int_to_ptr.hbm [resolvable:$true] %s131_s26 }
  0x1f   :  { %s79_s27 = sshll.u32 %s3164_s6, 4  ;;  %s108_s5 = sshll.u32 %s2457_s24, 4  ;;  %s80_s27 = int_to_ptr.hbm [resolvable:$true] %s79_s27  ;;  %s109_s5 = int_to_ptr.vmem [resolvable:$true] %s108_s5 }
  0x20   :  { %87 = dma.hbm_to_vmem [thread:$0]  %s80_s27, 2048, %s82_s28, [#allocation9], %s2455_s29, %s2455_s29, %s2456_s3  }
  0x21   :  { %111 = dma.hbm_to_vmem [thread:$0]  %s107_s30, 16, %s109_s5, [#allocation12]  }
  0x22   :  { %s2458_s25 = smov [#allocation14]   ;;  %s2459_s2 = smov 1024  }
  0x23   :  { %s133_s1 = sshll.u32 %s2458_s25, 4  ;;  %s2460_s6 = smov 64   ;;  %s134_s1 = int_to_ptr.vmem [resolvable:$true] %s133_s1 }
  0x24   :  { %139 = dma.hbm_to_vmem [thread:$0]  %s132_s26, 8192, %s134_s1, [#allocation15], %s2459_s2, %s2459_s2, %s2460_s6  }
  0x25   :  { %s155_s8 = sshll.u32 %s3141_s13, 4  ;;  %s2461_s28 = smov [#allocation17]   ;;  %s156_s8 = int_to_ptr.hbm [resolvable:$true] %s155_s8 }
  0x26   :  { %s157_s29 = sshll.u32 %s2461_s28, 4  ;;  %s3165_s21 = sld [smem:[#allocation37_spill]]  ;;  %s158_s29 = int_to_ptr.vmem [resolvable:$true] %s157_s29 }
  0x27   :  { %163 = dma.hbm_to_vmem [thread:$0]  %s156_s8, 8192, %s158_s29, [#allocation18], %s2459_s2, %s2459_s2, %s2460_s6  }
  0x28   :  { %s2462_s23 = smov [#allocation2]   ;;  %s3166_s5 = sld [smem:[#allocation40_spill]] }
  0x29   :  { %s47_s4 = sshll.u32 %s2462_s23, 4  ;;  %s3167_s1 = sld [smem:[#allocation42_spill]]  ;;  %s48_s4 = int_to_ptr.vmem [resolvable:$true] %s47_s4 }
  0x2a   :  { %s2463_s7 = smov [#allocation7]   ;;  %s2464_s2 = smov [#allocation10]  }
  0x2b   :  { %s71_s28 = sshll.u32 %s2463_s7, 4  ;;  %s95_s6 = sshll.u32 %s2464_s2, 4  ;;  %s72_s28 = int_to_ptr.vmem [resolvable:$true] %s71_s28  ;;  %s96_s6 = int_to_ptr.vmem [resolvable:$true] %s95_s6 }
  0x2c   :  { %s45_s11 = sshll.u32 %s3165_s21, 4  ;;  %s116_s3 = sshll.u32 %s3137_s9, 4  ;;  %s46_s11 = int_to_ptr.hbm [resolvable:$true] %s45_s11  ;;  %s117_s3 = int_to_ptr.hbm [resolvable:$true] %s116_s3 }
  0x2d   :  { %50 = dma.hbm_to_vmem [thread:$0]  %s46_s11, 32, %s48_s4, [#allocation3]  }
  0x2e   :  { %s69_s26 = sshll.u32 %s3166_s5, 4  ;;  %s2465_s0 = smov [#allocation13]   ;;  %s70_s26 = int_to_ptr.hbm [resolvable:$true] %s69_s26 }
  0x2f   :  { %s93_s27 = sshll.u32 %s3167_s1, 4  ;;  %s118_s21 = sshll.u32 %s2465_s0, 4  ;;  %s94_s27 = int_to_ptr.hbm [resolvable:$true] %s93_s27  ;;  %s119_s21 = int_to_ptr.vmem [resolvable:$true] %s118_s21 }
  0x30   :  { %74 = dma.hbm_to_vmem [thread:$0]  %s70_s26, 16, %s72_s28, [#allocation6]  }
  0x31   :  { %98 = dma.hbm_to_vmem [thread:$0]  %s94_s27, 32, %s96_s6, [#allocation9]  }
  0x32   :  { %s145_s4 = sshll.u32 %s3140_s12, 4  ;;  %s2466_s30 = smov 1536   ;;  %s146_s4 = int_to_ptr.hbm [resolvable:$true] %s145_s4 }
  0x33   :  { %s2467_s24 = smov 96   ;;  %s2468_s5 = smov [#allocation16]  }
  0x34   :  { %124 = dma.hbm_to_vmem [thread:$0]  %s117_s3, 12288, %s119_s21, [#allocation12], %s2466_s30, %s2466_s30, %s2467_s24  }
  0x35   :  { %s147_s26 = sshll.u32 %s2468_s5, 4  ;;  %s169_s9 = sshll.u32 %s3142_s14, 4  ;;  %s148_s26 = int_to_ptr.vmem [resolvable:$true] %s147_s26  ;;  %s170_s9 = int_to_ptr.hbm [resolvable:$true] %s169_s9 }
  0x36   :  { %150 = dma.hbm_to_vmem [thread:$0]  %s146_s4, 128, %s148_s26, [#allocation15]  }
  0x37   :  { %s2469_s1 = smov [#allocation19]  }
  0x38   :  { %s171_s27 = sshll.u32 %s2469_s1, 4  ;;  %s172_s27 = int_to_ptr.vmem [resolvable:$true] %s171_s27 }
  0x39   :  { %174 = dma.hbm_to_vmem [thread:$0]  %s170_s9, 128, %s172_s27, [#allocation18]  }
  0x3a   :  { %2435 = dma.done.wait [#allocation3], 32  }
  0x3b   :  { %2436 = vsyncadd [#allocation3], 4294967264 }
  0x3c   :  { %2437 = dma.done.wait [#allocation6], 144  }
  0x3d   :  { %2438 = vsyncadd [#allocation6], 4294967152 }
  0x3e   :  { %2439 = dma.done.wait [#allocation9], 2080  }
  0x3f   :  { %2440 = vsyncadd [#allocation9], 4294965216 }
  0x40   :  { %2441 = dma.done.wait [#allocation12], 12304  }
  0x41   :  { %2442 = vsyncadd [#allocation12], 4294954992 }
  0x42   :  { %2443 = dma.done.wait [#allocation15], 8320  }
  0x43   :  { %2444 = vsyncadd [#allocation15], 4294958976 }
  0x44   :  { %2445 = dma.done.wait [#allocation18], 8320  }
  0x45   :  { %2446 = vsyncadd [#allocation18], 4294958976  ;;  %v2470_v0 = vmov 0   ;;  %s3168_s7 = sld [smem:[#allocation36_spill]]  ;;  %v2471_v2 = vmov 1   ;;  %v249_v3 = vld [vmem:[#allocation5] sm:$0xff] }
  0x46   :  { %1960 = vset.pattern.permute.xlu0 %v2470_v0  ;;  %273 = vmatpush.msra.mxu0 %v249_v3  ;;  %v293_v4 = vld [vmem:[#allocation8 + $0x70] sm:$0xff]  ;;  %v294_v5 = vld [vmem:[#allocation8 + $0x78] sm:$0xff]  ;;  %v291_v6 = vld [vmem:[#allocation8 + $0x60] sm:$0xff]  ;;  %s3169_s6 = sld [smem:[#allocation38_spill]]  ;;  %vm254_vm0 = vcmask 64512   ;;  %vm301_vm1 = vcmask 523264  }
  0x47   :  { %313 = vmatpush.msra.mxu1 %v293_v4  ;;  %333 = vmatpush.msra.mxu2 %v294_v5  ;;  %v292_v7 = vld [vmem:[#allocation8 + $0x68] sm:$0xff]  ;;  %v289_v8 = vld [vmem:[#allocation8 + $0x50] sm:$0xff]  ;;  %v290_v9 = vld [vmem:[#allocation8 + $0x58] sm:$0xff]  ;;  %s3170_s3 = sld [smem:[#allocation43_spill]]  ;;  %s1814_s4 = sshll.u32 %s3147_s19, 4  ;;  %s1815_s4 = int_to_ptr.hbm [resolvable:$true] %s1814_s4 }
  0x48   :  { %v228_v11 = vld [vmem:[#allocation2] sm:$0x3]  ;;  %v287_v21 = vld [vmem:[#allocation8 + $0x40] sm:$0xff]  ;;  %v288_v22 = vld [vmem:[#allocation8 + $0x48] sm:$0xff]  ;;  %s2473_s19 = smov [#allocation21]   ;;  %s1825_s26 = sshll.u32 %s3148_s20, 4  ;;  %s1826_s26 = int_to_ptr.hbm [resolvable:$true] %s1825_s26 }
  0x49   :  { %314 = vmatpush.msra.mxu1 %v291_v6  ;;  %334 = vmatpush.msra.mxu2 %v292_v7  ;;  %v234_v12 = vperm.slane %v228_v11, 0  ;;  %v240_v13 = vperm.slane %v228_v11, 1  ;;  %v285_v23 = vld [vmem:[#allocation8 + $0x30] sm:$0xff]  ;;  %v286_v24 = vld [vmem:[#allocation8 + $0x38] sm:$0xff]  ;;  %v283_v25 = vld [vmem:[#allocation8 + $0x20] sm:$0xff]  ;;  %s1823_s30 = sshll.u32 %s2473_s19, 4  ;;  %s1824_s30 = int_to_ptr.vmem [resolvable:$true] %s1823_s30 }
  0x4a   :  { %v284_v26 = vld [vmem:[#allocation8 + $0x28] sm:$0xff]  ;;  %v281_v27 = vld [vmem:[#allocation8 + $0x10] sm:$0xff]  ;;  %v282_v28 = vld [vmem:[#allocation8 + $0x18] sm:$0xff]  ;;  %s1847_s12 = sshll.u32 %s3150_s22, 4  ;;  %s2475_s22 = smov [#allocation23]   ;;  %s1848_s12 = int_to_ptr.hbm [resolvable:$true] %s1847_s12 }
  0x4b   :  { %v227_v1 = vld [vmem:[%s3168_s7] sm:$0xff]  ;;  %315 = vmatpush.msra.mxu1 %v289_v8  ;;  %335 = vmatpush.msra.mxu2 %v290_v9  ;;  %v279_v29 = vld [vmem:[#allocation8] sm:$0xff]  ;;  %v280_v30 = vld [vmem:[#allocation8 + $0x8] sm:$0xff]  ;;  %s1834_s14 = sshll.u32 %s2475_s22, 4  ;;  %s1835_s14 = int_to_ptr.vmem [resolvable:$true] %s1834_s14 }
  0x4c   :  { %231 = vperm.xlu0 %1960, %v227_v1   ;;  %v1962_v16 = vld [vmem:[%s3169_s6] ss:$0 sm:$0xff]  ;;  %v1963_v50 = vld [vmem:[#allocation7] ss:$0 sm:$0xff]  ;;  %v508_v3 = vld [vmem:[#allocation13 + $0x2a0] sm:$0xff]  ;;  %s2476_s6 = smov [#allocation26]  }
  0x4d   :  { %316 = vmatpush.msra.mxu1 %v287_v21  ;;  %336 = vmatpush.msra.mxu2 %v288_v22  ;;  %v362_v31 = vld [vmem:[%s3170_s3 + $0x78] sm:$0xff]  ;;  %v361_v32 = vld [vmem:[%s3170_s3 + $0x70] sm:$0xff]  ;;  %v360_v34 = vld [vmem:[%s3170_s3 + $0x68] sm:$0xff]  ;;  %s1856_s8 = sshll.u32 %s2476_s6, 4  ;;  %s1857_s8 = int_to_ptr.vmem [resolvable:$true] %s1856_s8 }
  0x4e   :  { %383 = vmatpush.msra.mxu3 %v362_v31  ;;  %v378_v33 = vld [vmem:[%s3170_s3 + $0xf8] sm:$0xff]  ;;  %v377_v35 = vld [vmem:[%s3170_s3 + $0xf0] sm:$0xff]  ;;  %v376_v36 = vld [vmem:[%s3170_s3 + $0xe8] sm:$0xff] }
  0x4f   :  { %317 = vmatpush.msra.mxu1 %v285_v23  ;;  %337 = vmatpush.msra.mxu2 %v286_v24  ;;  %v359_v37 = vld [vmem:[%s3170_s3 + $0x60] sm:$0xff]  ;;  %v358_v39 = vld [vmem:[%s3170_s3 + $0x58] sm:$0xff]  ;;  %v357_v41 = vld [vmem:[%s3170_s3 + $0x50] sm:$0xff] }
  0x50   :  { %403 = vmatpush.msrb.mxu0 %v378_v33  ;;  %384 = vmatpush.msra.mxu3 %v361_v32  ;;  %v375_v38 = vld [vmem:[%s3170_s3 + $0xe0] sm:$0xff]  ;;  %v374_v40 = vld [vmem:[%s3170_s3 + $0xd8] sm:$0xff]  ;;  %v373_v42 = vld [vmem:[%s3170_s3 + $0xd0] sm:$0xff] }
  0x51   :  { %318 = vmatpush.msra.mxu1 %v283_v25  ;;  %338 = vmatpush.msra.mxu2 %v284_v26  ;;  %v356_v43 = vld [vmem:[%s3170_s3 + $0x48] sm:$0xff]  ;;  %v355_v45 = vld [vmem:[%s3170_s3 + $0x40] sm:$0xff]  ;;  %v354_v47 = vld [vmem:[%s3170_s3 + $0x38] sm:$0xff] }
  0x52   :  { %404 = vmatpush.msrb.mxu0 %v377_v35  ;;  %385 = vmatpush.msra.mxu3 %v360_v34  ;;  %v372_v44 = vld [vmem:[%s3170_s3 + $0xc8] sm:$0xff]  ;;  %v371_v46 = vld [vmem:[%s3170_s3 + $0xc0] sm:$0xff]  ;;  %v353_v48 = vld [vmem:[%s3170_s3 + $0x30] sm:$0xff] }
  0x53   :  { %319 = vmatpush.msra.mxu1 %v281_v27  ;;  %339 = vmatpush.msra.mxu2 %v282_v28  ;;  %v352_v49 = vld [vmem:[%s3170_s3 + $0x28] sm:$0xff]  ;;  %v351_v54 = vld [vmem:[%s3170_s3 + $0x20] sm:$0xff]  ;;  %v370_v55 = vld [vmem:[%s3170_s3 + $0xb8] sm:$0xff] }
  0x54   :  { %1961 = vset.pattern.permute.xlu0 %v2471_v2  ;;  %405 = vmatpush.msrb.mxu0 %v376_v36  ;;  %v350_v56 = vld [vmem:[%s3170_s3 + $0x18] sm:$0xff]  ;;  %v369_v57 = vld [vmem:[%s3170_s3 + $0xb0] sm:$0xff]  ;;  %v368_v59 = vld [vmem:[%s3170_s3 + $0xa8] sm:$0xff] }
  0x55   :  { %237 = vperm.xlu0 %1961, %v227_v1   ;;  %320 = vmatpush.msra.mxu1 %v279_v29  ;;  %v349_v58 = vld [vmem:[%s3170_s3 + $0x10] sm:$0xff]  ;;  %v348_v60 = vld [vmem:[%s3170_s3 + $0x8] sm:$0xff]  ;;  %v367_v61 = vld [vmem:[%s3170_s3 + $0xa0] sm:$0xff] }
  0x56   :  { %340 = vmatpush.msra.mxu2 %v280_v30  ;;  %386 = vmatpush.msra.mxu3 %v359_v37  ;;  %v347_v62 = vld [vmem:[%s3170_s3] sm:$0xff]  ;;  %v366_v63 = vld [vmem:[%s3170_s3 + $0x98] sm:$0xff]  ;;  %v365_v0 = vld [vmem:[%s3170_s3 + $0x90] sm:$0xff] }
  0x57   :  { %406 = vmatpush.msrb.mxu0 %v375_v38  ;;  %v364_v1 = vld [vmem:[%s3170_s3 + $0x88] sm:$0xff]  ;;  %v363_v2 = vld [vmem:[%s3170_s3 + $0x80] sm:$0xff]  ;;  %v509_v4 = vld [vmem:[#allocation13 + $0x2a8] sm:$0xff]  ;;  %559 = vmatpush.msrb.mxu1 %v508_v3  ;;  %s3173_s3 = sld [smem:[#allocation44_spill]] }
  0x58   :  { %387 = vmatpush.msra.mxu3 %v358_v39  ;;  %v512_v5 = vld [vmem:[#allocation13 + $0x2c0] sm:$0xff]  ;;  %579 = vmatpush.msrb.mxu2 %v509_v4  ;;  %v513_v6 = vld [vmem:[#allocation13 + $0x2c8] sm:$0xff]  ;;  %v295_v27 = vld [vmem:[#allocation10] sm:$0x3] }
  0x59   :  { %407 = vmatpush.msrb.mxu0 %v374_v40  ;;  %v496_v7 = vld [vmem:[#allocation13 + $0x240] sm:$0xff]  ;;  %v497_v8 = vld [vmem:[#allocation13 + $0x248] sm:$0xff]  ;;  %v297_v34 = vperm.slane %v295_v27, 0  ;;  %v510_v37 = vld [vmem:[#allocation13 + $0x2b0] sm:$0xff] }
  0x5a   :  { %388 = vmatpush.msra.mxu3 %v357_v41  ;;  %v500_v9 = vld [vmem:[#allocation13 + $0x260] sm:$0xff]  ;;  %560 = vmatpush.msrb.mxu1 %v496_v7  ;;  %v465_v22 = vld [vmem:[#allocation13 + $0x148] sm:$0xff]  ;;  %v511_v38 = vld [vmem:[#allocation13 + $0x2b8] sm:$0xff] }
  0x5b   :  { %408 = vmatpush.msrb.mxu0 %v373_v42  ;;  %v484_v11 = vld [vmem:[#allocation13 + $0x1e0] sm:$0xff]  ;;  %580 = vmatpush.msrb.mxu2 %v497_v8  ;;  %v449_v24 = vld [vmem:[#allocation13 + $0xc8] sm:$0xff]  ;;  %v498_v40 = vld [vmem:[#allocation13 + $0x250] sm:$0xff] }
  0x5c   :  { %389 = vmatpush.msra.mxu3 %v356_v43  ;;  %561 = vmatpush.msrb.mxu1 %v484_v11  ;;  %v464_v21 = vld [vmem:[#allocation13 + $0x140] sm:$0xff]  ;;  %v453_v26 = vld [vmem:[#allocation13 + $0xe8] sm:$0xff]  ;;  %v499_v41 = vld [vmem:[#allocation13 + $0x258] sm:$0xff]  ;;  %v298_v43 = vperm.slane %v295_v27, 1 }
  0x5d   :  { %409 = vmatpush.msrb.mxu0 %v372_v44  ;;  %v448_v23 = vld [vmem:[#allocation13 + $0xc0] sm:$0xff]  ;;  %v437_v29 = vld [vmem:[#allocation13 + $0x68] sm:$0xff]  ;;  %v438_v4 = vld [vmem:[#allocation13 + $0x70] sm:$0xff]  ;;  %s1836_s2 = sshll.u32 %s3173_s3, 4  ;;  %s1837_s2 = int_to_ptr.hbm [resolvable:$true] %s1836_s2 }
  0x5e   :  { %390 = vmatpush.msra.mxu3 %v355_v45  ;;  %v452_v25 = vld [vmem:[#allocation13 + $0xe0] sm:$0xff]  ;;  %v441_v31 = vld [vmem:[#allocation13 + $0x88] sm:$0xff]  ;;  %v426_v8 = vld [vmem:[#allocation13 + $0x10] sm:$0xff] }
  0x5f   :  { %410 = vmatpush.msrb.mxu0 %v371_v46  ;;  %v436_v28 = vld [vmem:[#allocation13 + $0x60] sm:$0xff]  ;;  %v425_v33 = vld [vmem:[#allocation13 + $0x8] sm:$0xff]  ;;  %v491_v27 = vld [vmem:[#allocation13 + $0x218] sm:$0xff] }
  0x60   :  { %391 = vmatpush.msra.mxu3 %v354_v47  ;;  %v440_v30 = vld [vmem:[#allocation13 + $0x80] sm:$0xff]  ;;  %v429_v36 = vld [vmem:[#allocation13 + $0x28] sm:$0xff] }
  0x61   :  { %411 = vmatpush.msrb.mxu0 %v370_v55  ;;  %v424_v32 = vld [vmem:[#allocation13] sm:$0xff]  ;;  %v493_v55 = vld [vmem:[#allocation13 + $0x228] sm:$0xff] }
  0x62   :  { %392 = vmatpush.msra.mxu3 %v353_v48  ;;  %v428_v35 = vld [vmem:[#allocation13 + $0x20] sm:$0xff]  ;;  %v457_v3 = vld [vmem:[#allocation13 + $0x108] sm:$0xff] }
  0x63   :  { %412 = vmatpush.msrb.mxu0 %v369_v57  ;;  %v516_v46 = vld [vmem:[#allocation13 + $0x2e0] sm:$0xff]  ;;  %v475_v57 = vld [vmem:[#allocation13 + $0x198] sm:$0xff]  ;;  %v445_v7 = vld [vmem:[#allocation13 + $0xa8] sm:$0xff] }
  0x64   :  { %393 = vmatpush.msra.mxu3 %v352_v49  ;;  %v504_v48 = vld [vmem:[#allocation13 + $0x280] sm:$0xff]  ;;  %v517_v49 = vld [vmem:[#allocation13 + $0x2e8] sm:$0xff] }
  0x65   :  { %413 = vmatpush.msrb.mxu0 %v368_v59  ;;  %v481_v59 = vld [vmem:[#allocation13 + $0x1c8] sm:$0xff] }
  0x66   :  { %394 = vmatpush.msra.mxu3 %v351_v54  ;;  %v492_v54 = vld [vmem:[#allocation13 + $0x220] sm:$0xff]  ;;  %v433_v11 = vld [vmem:[#allocation13 + $0x48] sm:$0xff] }
  0x67   :  { %414 = vmatpush.msrb.mxu0 %v367_v61  ;;  %v463_v61 = vld [vmem:[#allocation13 + $0x138] sm:$0xff] }
  0x68   :  { %395 = vmatpush.msra.mxu3 %v350_v56  ;;  %v474_v56 = vld [vmem:[#allocation13 + $0x190] sm:$0xff] }
  0x69   :  { %415 = vmatpush.msrb.mxu0 %v366_v63  ;;  %v469_v63 = vld [vmem:[#allocation13 + $0x168] sm:$0xff] }
  0x6a   :  { %396 = vmatpush.msra.mxu3 %v349_v58  ;;  %v480_v58 = vld [vmem:[#allocation13 + $0x1c0] sm:$0xff] }
  0x6b   :  { %416 = vmatpush.msrb.mxu0 %v365_v0  ;;  %v450_v0 = vld [vmem:[#allocation13 + $0xd0] sm:$0xff] }
  0x6c   :  { %397 = vmatpush.msra.mxu3 %v348_v60  ;;  %v462_v60 = vld [vmem:[#allocation13 + $0x130] sm:$0xff] }
  0x6d   :  { %417 = vmatpush.msrb.mxu0 %v364_v1  ;;  %v451_v1 = vld [vmem:[#allocation13 + $0xd8] sm:$0xff] }
  0x6e   :  { %398 = vmatpush.msra.mxu3 %v347_v62  ;;  %v468_v62 = vld [vmem:[#allocation13 + $0x160] sm:$0xff] }
  0x6f   :  { %418 = vmatpush.msrb.mxu0 %v363_v2  ;;  %v456_v2 = vld [vmem:[#allocation13 + $0x100] sm:$0xff] }
  0x70   :  { %639 = vmatpush.msrb.mxu3 %v512_v5  ;;  %v439_v5 = vld [vmem:[#allocation13 + $0x78] sm:$0xff] }
  0x72   :  { %640 = vmatpush.msrb.mxu3 %v500_v9  ;;  %v427_v9 = vld [vmem:[#allocation13 + $0x18] sm:$0xff] }
  0xbe   :  { %v232_v10 = vpop.permute.xlu0 %231 }
  0xbf   :  { %v235_v15 = vmul.f32 %v234_v12, %v232_v10  ;;  %v501_v10 = vld [vmem:[#allocation13 + $0x268] sm:$0xff] }
  0xc0   :  { %v485_v12 = vld [vmem:[#allocation13 + $0x1e8] sm:$0xff] }
  0xc1   :  { %581 = vmatpush.msrb.mxu2 %v485_v12  ;;  %v1964_v12 = vld [vmem:[#allocation11] ss:$0 sm:$0xff] }
  0xc7   :  { %v238_v14 = vpop.permute.xlu0 %237 }
  0xc8   :  { %v241_v17 = vmul.f32 %v240_v13, %v238_v14  ;;  %v488_v13 = vld [vmem:[#allocation13 + $0x200] sm:$0xff]  ;;  %v489_v14 = vld [vmem:[#allocation13 + $0x208] sm:$0xff] }
  0xc9   :  { %641 = vmatpush.msrb.mxu3 %v488_v13 }
  0xca   :  { %v242_v18 = vadd.f32 %v241_v17, %v235_v15  ;;  %v472_v15 = vld [vmem:[#allocation13 + $0x180] sm:$0xff] }
  0xcb   :  { %v476_v17 = vld [vmem:[#allocation13 + $0x1a0] sm:$0xff]  ;;  %562 = vmatpush.msrb.mxu1 %v472_v15 }
  0xcc   :  { %v247_v19 = vadd.f32 %v1962_v16, %v242_v18  ;;  %v473_v16 = vld [vmem:[#allocation13 + $0x188] sm:$0xff]  ;;  %642 = vmatpush.msrb.mxu3 %v476_v17 }
  0xcd   :  { %v477_v18 = vld [vmem:[#allocation13 + $0x1a8] sm:$0xff]  ;;  %582 = vmatpush.msrb.mxu2 %v473_v16 }
  0xce   :  { %1965 = vtanh.f32 %v247_v19  ;;  %v460_v19 = vld [vmem:[#allocation13 + $0x120] sm:$0xff]  ;;  %643 = vmatpush.msrb.mxu3 %v464_v21  ;;  %v960_v21 = vld [vmem:[#allocation14 + $0x1c8] sm:$0xff] }
  0xcf   :  { %563 = vmatpush.msrb.mxu1 %v460_v19  ;;  %v515_v19 = vld [vmem:[#allocation13 + $0x2d8] sm:$0xff] }
  0xd0   :  { %644 = vmatpush.msrb.mxu3 %v452_v25  ;;  %v952_v25 = vld [vmem:[#allocation14 + $0x188] sm:$0xff] }
  0xd1   :  { %564 = vmatpush.msrb.mxu1 %v448_v23  ;;  %v503_v23 = vld [vmem:[#allocation13 + $0x278] sm:$0xff] }
  0xd2   :  { %645 = vmatpush.msrb.mxu3 %v440_v30  ;;  %v478_v30 = vld [vmem:[#allocation13 + $0x1b0] sm:$0xff] }
  0xd3   :  { %565 = vmatpush.msrb.mxu1 %v436_v28  ;;  %v943_v28 = vld [vmem:[#allocation14 + $0x140] sm:$0xff] }
  0xd4   :  { %v1966_v20 = vpop.eup %1965  ;;  %646 = vmatpush.msrb.mxu3 %v428_v35  ;;  %v467_v35 = vld [vmem:[#allocation13 + $0x158] sm:$0xff] }
  0xd5   :  { %1891 = vmatmul.msk.f32.vlgmr.msra.gmra.mxu0 %vm254_vm0, %v1966_v20  ;;  %v461_v20 = vld [vmem:[#allocation13 + $0x128] sm:$0xff]  ;;  %566 = vmatpush.msrb.mxu1 %v424_v32  ;;  %v935_v32 = vld [vmem:[#allocation14 + $0x100] sm:$0xff] }
  0xd6   :  { %659 = vmatpush.msra.mxu0 %v513_v6  ;;  %583 = vmatpush.msrb.mxu2 %v461_v20  ;;  %v444_v6 = vld [vmem:[#allocation13 + $0xa0] sm:$0xff] }
  0xd7   :  { %v959_v20 = vld [vmem:[#allocation14 + $0x1c0] sm:$0xff] }
  0xd8   :  { %660 = vmatpush.msra.mxu0 %v501_v10  ;;  %584 = vmatpush.msrb.mxu2 %v449_v24  ;;  %v432_v10 = vld [vmem:[#allocation13 + $0x40] sm:$0xff] }
  0xd9   :  { %v951_v24 = vld [vmem:[#allocation14 + $0x180] sm:$0xff] }
  0xda   :  { %661 = vmatpush.msra.mxu0 %v489_v14  ;;  %585 = vmatpush.msrb.mxu2 %v437_v29  ;;  %v944_v29 = vld [vmem:[#allocation14 + $0x148] sm:$0xff] }
  0xdc   :  { %662 = vmatpush.msra.mxu0 %v477_v18  ;;  %586 = vmatpush.msrb.mxu2 %v425_v33  ;;  %v514_v18 = vld [vmem:[#allocation13 + $0x2d0] sm:$0xff]  ;;  %v936_v33 = vld [vmem:[#allocation14 + $0x108] sm:$0xff] }
  0xde   :  { %663 = vmatpush.msra.mxu0 %v465_v22  ;;  %v502_v22 = vld [vmem:[#allocation13 + $0x270] sm:$0xff] }
  0xe0   :  { %664 = vmatpush.msra.mxu0 %v453_v26  ;;  %v490_v26 = vld [vmem:[#allocation13 + $0x210] sm:$0xff] }
  0xe2   :  { %665 = vmatpush.msra.mxu0 %v441_v31  ;;  %v479_v31 = vld [vmem:[#allocation13 + $0x1b8] sm:$0xff] }
  0xe4   :  { %666 = vmatpush.msra.mxu0 %v429_v36  ;;  %v927_v36 = vld [vmem:[#allocation14 + $0xc0] sm:$0xff] }
 0x152   :  { %v275_v51 = vpop.f32.mrf.mxu0 }
 0x153   :  { %v276_v52 = vadd.f32 %v1963_v50, %v275_v51  ;;  %v505_v51 = vld [vmem:[#allocation13 + $0x288] sm:$0xff] }
 0x155   :  { %1967 = vtanh.f32 %v276_v52  ;;  %v486_v52 = vld [vmem:[#allocation13 + $0x1f0] sm:$0xff] }
 0x15b   :  { %v1968_v53 = vpop.eup %1967 }
 0x15c   :  { %1892 = vmatmul.msk.f32.vlgmr.msra.gmra.mxu1 %vm301_vm1, %v1968_v53  ;;  %1893 = vmatmul.msk.f32.vlgmr.msra.gmra.mxu2 %vm301_vm1, %v1968_v53  ;;  %v487_v53 = vld [vmem:[#allocation13 + $0x1f8] sm:$0xff] }
 0x15d   :  { %599 = vmatpush.msra.mxu1 %v510_v37  ;;  %619 = vmatpush.msra.mxu2 %v511_v38  ;;  %v928_v37 = vld [vmem:[#allocation14 + $0xc8] sm:$0xff]  ;;  %v454_v38 = vld [vmem:[#allocation13 + $0xf0] sm:$0xff] }
 0x15f   :  { %600 = vmatpush.msra.mxu1 %v498_v40  ;;  %620 = vmatpush.msra.mxu2 %v499_v41  ;;  %v919_v40 = vld [vmem:[#allocation14 + $0x80] sm:$0xff]  ;;  %v920_v41 = vld [vmem:[#allocation14 + $0x88] sm:$0xff] }
 0x161   :  { %601 = vmatpush.msra.mxu1 %v486_v52  ;;  %621 = vmatpush.msra.mxu2 %v487_v53  ;;  %v963_v52 = vld [vmem:[#allocation14 + $0x1e0] sm:$0xff]  ;;  %v964_v53 = vld [vmem:[#allocation14 + $0x1e8] sm:$0xff] }
 0x163   :  { %602 = vmatpush.msra.mxu1 %v474_v56  ;;  %622 = vmatpush.msra.mxu2 %v475_v57  ;;  %v955_v56 = vld [vmem:[#allocation14 + $0x1a0] sm:$0xff]  ;;  %v956_v57 = vld [vmem:[#allocation14 + $0x1a8] sm:$0xff] }
 0x165   :  { %603 = vmatpush.msra.mxu1 %v462_v60  ;;  %623 = vmatpush.msra.mxu2 %v463_v61  ;;  %v947_v60 = vld [vmem:[#allocation14 + $0x160] sm:$0xff]  ;;  %v948_v61 = vld [vmem:[#allocation14 + $0x168] sm:$0xff] }
 0x167   :  { %604 = vmatpush.msra.mxu1 %v450_v0  ;;  %624 = vmatpush.msra.mxu2 %v451_v1  ;;  %v939_v0 = vld [vmem:[#allocation14 + $0x120] sm:$0xff]  ;;  %v940_v1 = vld [vmem:[#allocation14 + $0x128] sm:$0xff] }
 0x169   :  { %605 = vmatpush.msra.mxu1 %v438_v4  ;;  %625 = vmatpush.msra.mxu2 %v439_v5  ;;  %v931_v4 = vld [vmem:[#allocation14 + $0xe0] sm:$0xff]  ;;  %v932_v5 = vld [vmem:[#allocation14 + $0xe8] sm:$0xff] }
 0x16b   :  { %606 = vmatpush.msra.mxu1 %v426_v8  ;;  %626 = vmatpush.msra.mxu2 %v427_v9  ;;  %v923_v8 = vld [vmem:[#allocation14 + $0xa0] sm:$0xff]  ;;  %v924_v9 = vld [vmem:[#allocation14 + $0xa8] sm:$0xff] }
 0x1d9   :  { %v322_v39 = vpop.f32.mrf.mxu1 }
 0x1da   :  { %v323_v42 = vadd.f32 %v322_v39, %v297_v34  ;;  %v466_v34 = vld [vmem:[#allocation13 + $0x150] sm:$0xff]  ;;  %v455_v39 = vld [vmem:[#allocation13 + $0xf8] sm:$0xff] }
 0x1dc   :  { %1969 = vtanh.f32 %v323_v42  ;;  %v442_v42 = vld [vmem:[#allocation13 + $0x90] sm:$0xff] }
 0x1df   :  { %v342_v44 = vpop.f32.mrf.mxu2 }
 0x1e0   :  { %v343_v45 = vadd.f32 %v342_v44, %v298_v43  ;;  %v443_v43 = vld [vmem:[#allocation13 + $0x98] sm:$0xff]  ;;  %v911_v44 = vld [vmem:[#allocation14 + $0x40] sm:$0xff] }
 0x1e2   :  { %v1970_v47 = vpop.eup %1969  ;;  %1971 = vtanh.f32 %v343_v45  ;;  %v912_v45 = vld [vmem:[#allocation14 + $0x48] sm:$0xff] }
 0x1e3   :  { %399 = vmatmul.f32.vlgmr.msra.gmra.mxu3 %v1970_v47  ;;  %v431_v47 = vld [vmem:[#allocation13 + $0x38] sm:$0xff] }
 0x1e4   :  { %719 = vmatpush.msra.mxu3 %v516_v46  ;;  %v430_v46 = vld [vmem:[#allocation13 + $0x30] sm:$0xff] }
 0x1e6   :  { %720 = vmatpush.msra.mxu3 %v504_v48  ;;  %v903_v48 = vld [vmem:[#allocation14] sm:$0xff] }
 0x1e8   :  { %v1972_v50 = vpop.eup %1971  ;;  %721 = vmatpush.msra.mxu3 %v492_v54  ;;  %v506_v54 = vld [vmem:[#allocation13 + $0x290] sm:$0xff] }
 0x1e9   :  { %419 = vmatmul.f32.vlgmr.msrb.gmra.mxu0 %v1972_v50  ;;  %v518_v50 = vld [vmem:[#allocation13 + $0x2f0] sm:$0xff] }
 0x1ea   :  { %739 = vmatpush.msrb.mxu0 %v517_v49  ;;  %722 = vmatpush.msra.mxu3 %v480_v58  ;;  %v904_v49 = vld [vmem:[#allocation14 + $0x8] sm:$0xff]  ;;  %v494_v58 = vld [vmem:[#allocation13 + $0x230] sm:$0xff] }
 0x1ec   :  { %740 = vmatpush.msrb.mxu0 %v505_v51  ;;  %723 = vmatpush.msra.mxu3 %v468_v62  ;;  %v519_v51 = vld [vmem:[#allocation13 + $0x2f8] sm:$0xff]  ;;  %v482_v62 = vld [vmem:[#allocation13 + $0x1d0] sm:$0xff] }
 0x1ee   :  { %741 = vmatpush.msrb.mxu0 %v493_v55  ;;  %724 = vmatpush.msra.mxu3 %v456_v2  ;;  %v507_v55 = vld [vmem:[#allocation13 + $0x298] sm:$0xff]  ;;  %v470_v2 = vld [vmem:[#allocation13 + $0x170] sm:$0xff] }
 0x1f0   :  { %742 = vmatpush.msrb.mxu0 %v481_v59  ;;  %725 = vmatpush.msra.mxu3 %v444_v6  ;;  %v495_v59 = vld [vmem:[#allocation13 + $0x238] sm:$0xff]  ;;  %v458_v6 = vld [vmem:[#allocation13 + $0x110] sm:$0xff] }
 0x1f2   :  { %743 = vmatpush.msrb.mxu0 %v469_v63  ;;  %726 = vmatpush.msra.mxu3 %v432_v10  ;;  %v483_v63 = vld [vmem:[#allocation13 + $0x1d8] sm:$0xff]  ;;  %v446_v10 = vld [vmem:[#allocation13 + $0xb0] sm:$0xff] }
 0x1f4   :  { %744 = vmatpush.msrb.mxu0 %v457_v3  ;;  %v471_v3 = vld [vmem:[#allocation13 + $0x178] sm:$0xff] }
 0x1f6   :  { %745 = vmatpush.msrb.mxu0 %v445_v7  ;;  %v459_v7 = vld [vmem:[#allocation13 + $0x118] sm:$0xff] }
 0x1f8   :  { %746 = vmatpush.msrb.mxu0 %v433_v11  ;;  %v447_v11 = vld [vmem:[#allocation13 + $0xb8] sm:$0xff] }
 0x266   :  { %v400_v13 = vpop.f32.mrf.mxu3  ;;  %v420_v15 = vpop.f32.mrf.mxu0 }
 0x267   :  { %v401_v14 = vadd.f32 %v1964_v12, %v400_v13  ;;  %v915_v12 = vld [vmem:[#allocation14 + $0x60] sm:$0xff]  ;;  %v916_v13 = vld [vmem:[#allocation14 + $0x68] sm:$0xff] }
 0x269   :  { %v421_v16 = vadd.f32 %v420_v15, %v401_v14  ;;  %v434_v14 = vld [vmem:[#allocation13 + $0x50] sm:$0xff]  ;;  %v435_v15 = vld [vmem:[#allocation13 + $0x58] sm:$0xff] }
 0x26b   :  { %1973 = vtanh.f32 %v421_v16  ;;  %v907_v16 = vld [vmem:[#allocation14 + $0x20] sm:$0xff] }
 0x271   :  { %v2734_v17 = vpop.eup %1973 }
 0x272   :  { %1894 = vmatmul.msk.f32.vlgmr.msrb.gmra.mxu1 %vm301_vm1, %v2734_v17  ;;  %1895 = vmatmul.msk.f32.vlgmr.msrb.gmra.mxu2 %vm301_vm1, %v2734_v17 }
 0x273   :  { %1898 = vmatmul.msk.f32.vlgmr.msrb.gmra.mxu3 %vm301_vm1, %v2734_v17  ;;  %1899 = vmatmul.msk.f32.vlgmr.msra.gmra.mxu0 %vm301_vm1, %v2734_v17 }
 0x274   :  { %679 = vmatpush.msrb.mxu1 %v514_v18  ;;  %699 = vmatpush.msrb.mxu2 %v515_v19  ;;  %v908_v18 = vld [vmem:[#allocation14 + $0x28] sm:$0xff]  ;;  %v961_v19 = vld [vmem:[#allocation14 + $0x1d0] sm:$0xff] }
 0x275   :  { %993 = vmatpush.msrb.mxu3 %v959_v20  ;;  %1013 = vmatpush.msra.mxu0 %v960_v21  ;;  %v962_v20 = vld [vmem:[#allocation14 + $0x1d8] sm:$0xff]  ;;  %v1209_v21 = vld [vmem:[#allocation17 + $0x1c0] sm:$0xff] }
 0x276   :  { %680 = vmatpush.msrb.mxu1 %v502_v22  ;;  %700 = vmatpush.msrb.mxu2 %v503_v23  ;;  %v1210_v22 = vld [vmem:[#allocation17 + $0x1c8] sm:$0xff] }
 0x277   :  { %994 = vmatpush.msrb.mxu3 %v951_v24  ;;  %1014 = vmatpush.msra.mxu0 %v952_v25  ;;  %v953_v23 = vld [vmem:[#allocation14 + $0x190] sm:$0xff]  ;;  %v954_v24 = vld [vmem:[#allocation14 + $0x198] sm:$0xff]  ;;  %v1201_v25 = vld [vmem:[#allocation17 + $0x180] sm:$0xff] }
 0x278   :  { %681 = vmatpush.msrb.mxu1 %v490_v26  ;;  %701 = vmatpush.msrb.mxu2 %v491_v27  ;;  %v1202_v26 = vld [vmem:[#allocation17 + $0x188] sm:$0xff] }
 0x279   :  { %995 = vmatpush.msrb.mxu3 %v943_v28  ;;  %1015 = vmatpush.msra.mxu0 %v944_v29  ;;  %v945_v27 = vld [vmem:[#allocation14 + $0x150] sm:$0xff]  ;;  %v946_v28 = vld [vmem:[#allocation14 + $0x158] sm:$0xff]  ;;  %v1193_v29 = vld [vmem:[#allocation17 + $0x140] sm:$0xff] }
 0x27a   :  { %682 = vmatpush.msrb.mxu1 %v478_v30  ;;  %702 = vmatpush.msrb.mxu2 %v479_v31  ;;  %v1194_v30 = vld [vmem:[#allocation17 + $0x148] sm:$0xff] }
 0x27b   :  { %996 = vmatpush.msrb.mxu3 %v935_v32  ;;  %1016 = vmatpush.msra.mxu0 %v936_v33  ;;  %v937_v31 = vld [vmem:[#allocation14 + $0x110] sm:$0xff]  ;;  %v938_v32 = vld [vmem:[#allocation14 + $0x118] sm:$0xff]  ;;  %v1185_v33 = vld [vmem:[#allocation17 + $0x100] sm:$0xff] }
 0x27c   :  { %1896 = vmatmul.msk.f32.vlgmr.msra.gmra.mxu1 %vm301_vm1, %v2734_v17  ;;  %1897 = vmatmul.msk.f32.vlgmr.msra.gmra.mxu2 %vm301_vm1, %v2734_v17 }
 0x27d   :  { %683 = vmatpush.msrb.mxu1 %v466_v34  ;;  %703 = vmatpush.msrb.mxu2 %v467_v35  ;;  %v1186_v34 = vld [vmem:[#allocation17 + $0x108] sm:$0xff] }
 0x27e   :  { %1902 = vmatmul.msk.f32.vlgmr.msra.gmra.mxu3 %vm301_vm1, %v2734_v17  ;;  %1903 = vmatmul.msk.f32.vlgmr.msrb.gmra.mxu0 %vm301_vm1, %v2734_v17  ;;  %v929_v35 = vld [vmem:[#allocation14 + $0xd0] sm:$0xff] }
 0x27f   :  { %997 = vmatpush.msrb.mxu3 %v927_v36  ;;  %1017 = vmatpush.msra.mxu0 %v928_v37  ;;  %v930_v36 = vld [vmem:[#allocation14 + $0xd8] sm:$0xff]  ;;  %v1177_v37 = vld [vmem:[#allocation17 + $0xc0] sm:$0xff] }
 0x280   :  { %684 = vmatpush.msrb.mxu1 %v454_v38  ;;  %704 = vmatpush.msrb.mxu2 %v455_v39  ;;  %v1178_v38 = vld [vmem:[#allocation17 + $0xc8] sm:$0xff] }
 0x281   :  { %998 = vmatpush.msrb.mxu3 %v919_v40  ;;  %1018 = vmatpush.msra.mxu0 %v920_v41  ;;  %v921_v39 = vld [vmem:[#allocation14 + $0x90] sm:$0xff]  ;;  %v922_v40 = vld [vmem:[#allocation14 + $0x98] sm:$0xff]  ;;  %v1169_v41 = vld [vmem:[#allocation17 + $0x80] sm:$0xff] }
 0x282   :  { %685 = vmatpush.msrb.mxu1 %v442_v42  ;;  %705 = vmatpush.msrb.mxu2 %v443_v43  ;;  %v1170_v42 = vld [vmem:[#allocation17 + $0x88] sm:$0xff] }
 0x283   :  { %999 = vmatpush.msrb.mxu3 %v911_v44  ;;  %1019 = vmatpush.msra.mxu0 %v912_v45  ;;  %v913_v43 = vld [vmem:[#allocation14 + $0x50] sm:$0xff]  ;;  %v914_v44 = vld [vmem:[#allocation14 + $0x58] sm:$0xff]  ;;  %v1161_v45 = vld [vmem:[#allocation17 + $0x40] sm:$0xff] }
 0x284   :  { %686 = vmatpush.msrb.mxu1 %v430_v46  ;;  %706 = vmatpush.msrb.mxu2 %v431_v47  ;;  %v1162_v46 = vld [vmem:[#allocation17 + $0x48] sm:$0xff] }
 0x285   :  { %1000 = vmatpush.msrb.mxu3 %v903_v48  ;;  %1020 = vmatpush.msra.mxu0 %v904_v49  ;;  %v905_v47 = vld [vmem:[#allocation14 + $0x10] sm:$0xff]  ;;  %v906_v48 = vld [vmem:[#allocation14 + $0x18] sm:$0xff]  ;;  %v1153_v49 = vld [vmem:[#allocation17] sm:$0xff] }
 0x286   :  { %759 = vmatpush.msra.mxu1 %v518_v50  ;;  %779 = vmatpush.msra.mxu2 %v519_v51  ;;  %v1154_v50 = vld [vmem:[#allocation17 + $0x8] sm:$0xff] }
 0x287   :  { %1073 = vmatpush.msra.mxu3 %v963_v52  ;;  %1093 = vmatpush.msrb.mxu0 %v964_v53  ;;  %v965_v51 = vld [vmem:[#allocation14 + $0x1f0] sm:$0xff]  ;;  %v966_v52 = vld [vmem:[#allocation14 + $0x1f8] sm:$0xff]  ;;  %v1213_v53 = vld [vmem:[#allocation17 + $0x1e0] sm:$0xff] }
 0x288   :  { %1900 = vmatmul.msk.f32.vlgmr.msrb.gmra.mxu1 %vm301_vm1, %v2734_v17  ;;  %1901 = vmatmul.msk.f32.vlgmr.msrb.gmra.mxu2 %vm301_vm1, %v2734_v17 }
 0x289   :  { %1906 = vmatmul.msk.f32.vlgmr.msrb.gmra.mxu3 %vm301_vm1, %v2734_v17  ;;  %1907 = vmatmul.msk.f32.vlgmr.msra.gmra.mxu0 %vm301_vm1, %v2734_v17 }
 0x28a   :  { %760 = vmatpush.msra.mxu1 %v506_v54  ;;  %780 = vmatpush.msra.mxu2 %v507_v55  ;;  %v1214_v54 = vld [vmem:[#allocation17 + $0x1e8] sm:$0xff] }
 0x28b   :  { %1074 = vmatpush.msra.mxu3 %v955_v56  ;;  %1094 = vmatpush.msrb.mxu0 %v956_v57  ;;  %v957_v55 = vld [vmem:[#allocation14 + $0x1b0] sm:$0xff]  ;;  %v958_v56 = vld [vmem:[#allocation14 + $0x1b8] sm:$0xff]  ;;  %v1205_v57 = vld [vmem:[#allocation17 + $0x1a0] sm:$0xff] }
 0x28c   :  { %761 = vmatpush.msra.mxu1 %v494_v58  ;;  %781 = vmatpush.msra.mxu2 %v495_v59  ;;  %v1206_v58 = vld [vmem:[#allocation17 + $0x1a8] sm:$0xff] }
 0x28d   :  { %1075 = vmatpush.msra.mxu3 %v947_v60  ;;  %1095 = vmatpush.msrb.mxu0 %v948_v61  ;;  %v949_v59 = vld [vmem:[#allocation14 + $0x170] sm:$0xff]  ;;  %v950_v60 = vld [vmem:[#allocation14 + $0x178] sm:$0xff]  ;;  %v1197_v61 = vld [vmem:[#allocation17 + $0x160] sm:$0xff] }
 0x28e   :  { %762 = vmatpush.msra.mxu1 %v482_v62  ;;  %782 = vmatpush.msra.mxu2 %v483_v63  ;;  %v1198_v62 = vld [vmem:[#allocation17 + $0x168] sm:$0xff] }
 0x28f   :  { %1076 = vmatpush.msra.mxu3 %v939_v0  ;;  %1096 = vmatpush.msrb.mxu0 %v940_v1  ;;  %v941_v63 = vld [vmem:[#allocation14 + $0x130] sm:$0xff]  ;;  %v942_v0 = vld [vmem:[#allocation14 + $0x138] sm:$0xff]  ;;  %v1189_v1 = vld [vmem:[#allocation17 + $0x120] sm:$0xff] }
 0x290   :  { %763 = vmatpush.msra.mxu1 %v470_v2  ;;  %783 = vmatpush.msra.mxu2 %v471_v3  ;;  %v1190_v2 = vld [vmem:[#allocation17 + $0x128] sm:$0xff] }
 0x291   :  { %1077 = vmatpush.msra.mxu3 %v931_v4  ;;  %1097 = vmatpush.msrb.mxu0 %v932_v5  ;;  %v933_v3 = vld [vmem:[#allocation14 + $0xf0] sm:$0xff]  ;;  %v934_v4 = vld [vmem:[#allocation14 + $0xf8] sm:$0xff]  ;;  %v1181_v5 = vld [vmem:[#allocation17 + $0xe0] sm:$0xff] }
 0x292   :  { %764 = vmatpush.msra.mxu1 %v458_v6  ;;  %784 = vmatpush.msra.mxu2 %v459_v7  ;;  %v1182_v6 = vld [vmem:[#allocation17 + $0xe8] sm:$0xff] }
 0x293   :  { %1078 = vmatpush.msra.mxu3 %v923_v8  ;;  %1098 = vmatpush.msrb.mxu0 %v924_v9  ;;  %v925_v7 = vld [vmem:[#allocation14 + $0xb0] sm:$0xff]  ;;  %v926_v8 = vld [vmem:[#allocation14 + $0xb8] sm:$0xff]  ;;  %v1173_v9 = vld [vmem:[#allocation17 + $0xa0] sm:$0xff] }
 0x294   :  { %765 = vmatpush.msra.mxu1 %v446_v10  ;;  %785 = vmatpush.msra.mxu2 %v447_v11  ;;  %v1174_v10 = vld [vmem:[#allocation17 + $0xa8] sm:$0xff] }
 0x295   :  { %1079 = vmatpush.msra.mxu3 %v915_v12  ;;  %1099 = vmatpush.msrb.mxu0 %v916_v13  ;;  %v917_v11 = vld [vmem:[#allocation14 + $0x70] sm:$0xff]  ;;  %v918_v12 = vld [vmem:[#allocation14 + $0x78] sm:$0xff]  ;;  %v1165_v13 = vld [vmem:[#allocation17 + $0x60] sm:$0xff] }
 0x296   :  { %766 = vmatpush.msra.mxu1 %v434_v14  ;;  %786 = vmatpush.msra.mxu2 %v435_v15  ;;  %v1166_v14 = vld [vmem:[#allocation17 + $0x68] sm:$0xff] }
 0x297   :  { %1080 = vmatpush.msra.mxu3 %v907_v16  ;;  %1100 = vmatpush.msrb.mxu0 %v908_v18  ;;  %v909_v15 = vld [vmem:[#allocation14 + $0x30] sm:$0xff]  ;;  %v910_v16 = vld [vmem:[#allocation14 + $0x38] sm:$0xff]  ;;  %v1157_v18 = vld [vmem:[#allocation17 + $0x20] sm:$0xff] }
 0x298   :  { %1904 = vmatmul.msk.f32.vlgmr.msra.gmra.mxu1 %vm301_vm1, %v2734_v17  ;;  %1905 = vmatmul.msk.f32.vlgmr.msra.gmra.mxu2 %vm301_vm1, %v2734_v17 }
 0x299   :  { %1033 = vmatpush.msrb.mxu1 %v961_v19  ;;  %1053 = vmatpush.msrb.mxu2 %v962_v20  ;;  %v1158_v19 = vld [vmem:[#allocation17 + $0x28] sm:$0xff]  ;;  %v1211_v20 = vld [vmem:[#allocation17 + $0x1d0] sm:$0xff] }
 0x29a   :  { %1910 = vmatmul.msk.f32.vlgmr.msra.gmra.mxu3 %vm301_vm1, %v2734_v17  ;;  %1911 = vmatmul.msk.f32.vlgmr.msrb.gmra.mxu0 %vm301_vm1, %v2734_v17 }
 0x29b   :  { %1243 = vmatpush.msrb.mxu3 %v1209_v21  ;;  %1263 = vmatpush.msra.mxu0 %v1210_v22  ;;  %v1212_v21 = vld [vmem:[#allocation17 + $0x1d8] sm:$0xff]  ;;  %v1584_v22 = vld [vmem:[%s3143_s15 + $0xa8] sm:$0xff] }
 0x29c   :  { %1034 = vmatpush.msrb.mxu1 %v953_v23  ;;  %1054 = vmatpush.msrb.mxu2 %v954_v24  ;;  %v1585_v23 = vld [vmem:[%s3143_s15 + $0xb0] sm:$0xff]  ;;  %v1203_v24 = vld [vmem:[#allocation17 + $0x190] sm:$0xff] }
 0x29d   :  { %1244 = vmatpush.msrb.mxu3 %v1201_v25  ;;  %1264 = vmatpush.msra.mxu0 %v1202_v26  ;;  %v1204_v25 = vld [vmem:[#allocation17 + $0x198] sm:$0xff] }
 0x29e   :  { %1035 = vmatpush.msrb.mxu1 %v945_v27  ;;  %1055 = vmatpush.msrb.mxu2 %v946_v28  ;;  %v1581_v26 = vld [vmem:[%s3143_s15 + $0x90] sm:$0xff]  ;;  %v1582_v27 = vld [vmem:[%s3143_s15 + $0x98] sm:$0xff]  ;;  %v1195_v28 = vld [vmem:[#allocation17 + $0x150] sm:$0xff] }
 0x29f   :  { %1245 = vmatpush.msrb.mxu3 %v1193_v29  ;;  %1265 = vmatpush.msra.mxu0 %v1194_v30  ;;  %v1196_v29 = vld [vmem:[#allocation17 + $0x158] sm:$0xff]  ;;  %v1578_v30 = vld [vmem:[%s3143_s15 + $0x78] sm:$0xff] }
 0x2a0   :  { %1036 = vmatpush.msrb.mxu1 %v937_v31  ;;  %1056 = vmatpush.msrb.mxu2 %v938_v32  ;;  %v1579_v31 = vld [vmem:[%s3143_s15 + $0x80] sm:$0xff]  ;;  %v1187_v32 = vld [vmem:[#allocation17 + $0x110] sm:$0xff] }
 0x2a1   :  { %1246 = vmatpush.msrb.mxu3 %v1185_v33  ;;  %1266 = vmatpush.msra.mxu0 %v1186_v34  ;;  %v1188_v33 = vld [vmem:[#allocation17 + $0x118] sm:$0xff]  ;;  %v1575_v34 = vld [vmem:[%s3143_s15 + $0x60] sm:$0xff] }
 0x2a2   :  { %1037 = vmatpush.msrb.mxu1 %v929_v35  ;;  %1057 = vmatpush.msrb.mxu2 %v930_v36  ;;  %v1576_v35 = vld [vmem:[%s3143_s15 + $0x68] sm:$0xff] }
 0x2a3   :  { %1247 = vmatpush.msrb.mxu3 %v1177_v37  ;;  %1267 = vmatpush.msra.mxu0 %v1178_v38  ;;  %v1179_v36 = vld [vmem:[#allocation17 + $0xd0] sm:$0xff]  ;;  %v1180_v37 = vld [vmem:[#allocation17 + $0xd8] sm:$0xff] }
 0x2a4   :  { %1038 = vmatpush.msrb.mxu1 %v921_v39  ;;  %1058 = vmatpush.msrb.mxu2 %v922_v40  ;;  %v1572_v38 = vld [vmem:[%s3143_s15 + $0x48] sm:$0xff]  ;;  %v1573_v39 = vld [vmem:[%s3143_s15 + $0x50] sm:$0xff] }
 0x2a5   :  { %1248 = vmatpush.msrb.mxu3 %v1169_v41  ;;  %1268 = vmatpush.msra.mxu0 %v1170_v42  ;;  %v1171_v40 = vld [vmem:[#allocation17 + $0x90] sm:$0xff]  ;;  %v1172_v41 = vld [vmem:[#allocation17 + $0x98] sm:$0xff] }
 0x2a6   :  { %1039 = vmatpush.msrb.mxu1 %v913_v43  ;;  %1059 = vmatpush.msrb.mxu2 %v914_v44  ;;  %v1569_v42 = vld [vmem:[%s3143_s15 + $0x30] sm:$0xff]  ;;  %v1570_v43 = vld [vmem:[%s3143_s15 + $0x38] sm:$0xff]  ;;  %v1163_v44 = vld [vmem:[#allocation17 + $0x50] sm:$0xff] }
 0x2a7   :  { %1249 = vmatpush.msrb.mxu3 %v1161_v45  ;;  %1269 = vmatpush.msra.mxu0 %v1162_v46  ;;  %v1164_v45 = vld [vmem:[#allocation17 + $0x58] sm:$0xff]  ;;  %v1566_v46 = vld [vmem:[%s3143_s15 + $0x18] sm:$0xff] }
 0x2a8   :  { %1040 = vmatpush.msrb.mxu1 %v905_v47  ;;  %1060 = vmatpush.msrb.mxu2 %v906_v48  ;;  %v1567_v47 = vld [vmem:[%s3143_s15 + $0x20] sm:$0xff]  ;;  %v1155_v48 = vld [vmem:[#allocation17 + $0x10] sm:$0xff] }
 0x2a9   :  { %1250 = vmatpush.msrb.mxu3 %v1153_v49  ;;  %1270 = vmatpush.msra.mxu0 %v1154_v50  ;;  %v1156_v49 = vld [vmem:[#allocation17 + $0x18] sm:$0xff]  ;;  %v1563_v50 = vld [vmem:[%s3143_s15] sm:$0xff] }
 0x2aa   :  { %1908 = vmatmul.msk.f32.vlgmr.msrb.gmra.mxu1 %vm301_vm1, %v2734_v17  ;;  %1909 = vmatmul.msk.f32.vlgmr.msrb.gmra.mxu2 %vm301_vm1, %v2734_v17 }
 0x2ab   :  { %1113 = vmatpush.msra.mxu1 %v965_v51  ;;  %1133 = vmatpush.msra.mxu2 %v966_v52  ;;  %v1564_v51 = vld [vmem:[%s3143_s15 + $0x8] sm:$0xff] }
 0x2ac   :  { %1914 = vmatmul.msk.f32.vlgmr.msrb.gmra.mxu3 %vm301_vm1, %v2734_v17  ;;  %1915 = vmatmul.msk.f32.vlgmr.msra.gmra.mxu0 %vm301_vm1, %v2734_v17  ;;  %v1215_v52 = vld [vmem:[#allocation17 + $0x1f0] sm:$0xff] }
 0x2ad   :  { %1323 = vmatpush.msra.mxu3 %v1213_v53  ;;  %1343 = vmatpush.msrb.mxu0 %v1214_v54  ;;  %v1216_v53 = vld [vmem:[#allocation17 + $0x1f8] sm:$0xff] }
 0x2ae   :  { %1114 = vmatpush.msra.mxu1 %v957_v55  ;;  %1134 = vmatpush.msra.mxu2 %v958_v56  ;;  %v1680_v54 = vld [vmem:[%s3145_s17 + $0xb0] sm:$0xff]  ;;  %v1681_v55 = vld [vmem:[%s3145_s17 + $0xb8] sm:$0xff]  ;;  %v1207_v56 = vld [vmem:[#allocation17 + $0x1b0] sm:$0xff] }
 0x2af   :  { %1324 = vmatpush.msra.mxu3 %v1205_v57  ;;  %1344 = vmatpush.msrb.mxu0 %v1206_v58  ;;  %v1208_v57 = vld [vmem:[#allocation17 + $0x1b8] sm:$0xff]  ;;  %v1677_v58 = vld [vmem:[%s3145_s17 + $0x98] sm:$0xff] }
 0x2b0   :  { %1115 = vmatpush.msra.mxu1 %v949_v59  ;;  %1135 = vmatpush.msra.mxu2 %v950_v60  ;;  %v1678_v59 = vld [vmem:[%s3145_s17 + $0xa0] sm:$0xff]  ;;  %v1199_v60 = vld [vmem:[#allocation17 + $0x170] sm:$0xff] }
 0x2b1   :  { %1325 = vmatpush.msra.mxu3 %v1197_v61  ;;  %1345 = vmatpush.msrb.mxu0 %v1198_v62  ;;  %v1200_v61 = vld [vmem:[#allocation17 + $0x178] sm:$0xff]  ;;  %v1674_v62 = vld [vmem:[%s3145_s17 + $0x80] sm:$0xff] }
 0x2b2   :  { %1116 = vmatpush.msra.mxu1 %v941_v63  ;;  %1136 = vmatpush.msra.mxu2 %v942_v0  ;;  %v1675_v63 = vld [vmem:[%s3145_s17 + $0x88] sm:$0xff] }
 0x2b3   :  { %1326 = vmatpush.msra.mxu3 %v1189_v1  ;;  %1346 = vmatpush.msrb.mxu0 %v1190_v2  ;;  %v1191_v0 = vld [vmem:[#allocation17 + $0x130] sm:$0xff]  ;;  %v1192_v1 = vld [vmem:[#allocation17 + $0x138] sm:$0xff] }
 0x2b4   :  { %1117 = vmatpush.msra.mxu1 %v933_v3  ;;  %1137 = vmatpush.msra.mxu2 %v934_v4  ;;  %v1671_v2 = vld [vmem:[%s3145_s17 + $0x68] sm:$0xff]  ;;  %v1672_v3 = vld [vmem:[%s3145_s17 + $0x70] sm:$0xff] }
 0x2b5   :  { %1327 = vmatpush.msra.mxu3 %v1181_v5  ;;  %1347 = vmatpush.msrb.mxu0 %v1182_v6  ;;  %v1183_v4 = vld [vmem:[#allocation17 + $0xf0] sm:$0xff]  ;;  %v1184_v5 = vld [vmem:[#allocation17 + $0xf8] sm:$0xff] }
 0x2b6   :  { %1118 = vmatpush.msra.mxu1 %v925_v7  ;;  %1138 = vmatpush.msra.mxu2 %v926_v8  ;;  %v1668_v6 = vld [vmem:[%s3145_s17 + $0x50] sm:$0xff]  ;;  %v1669_v7 = vld [vmem:[%s3145_s17 + $0x58] sm:$0xff]  ;;  %v1175_v8 = vld [vmem:[#allocation17 + $0xb0] sm:$0xff] }
 0x2b7   :  { %1328 = vmatpush.msra.mxu3 %v1173_v9  ;;  %1348 = vmatpush.msrb.mxu0 %v1174_v10  ;;  %v1176_v9 = vld [vmem:[#allocation17 + $0xb8] sm:$0xff]  ;;  %v1665_v10 = vld [vmem:[%s3145_s17 + $0x38] sm:$0xff] }
 0x2b8   :  { %1119 = vmatpush.msra.mxu1 %v917_v11  ;;  %1139 = vmatpush.msra.mxu2 %v918_v12  ;;  %v1666_v11 = vld [vmem:[%s3145_s17 + $0x40] sm:$0xff]  ;;  %v1167_v12 = vld [vmem:[#allocation17 + $0x70] sm:$0xff] }
 0x2b9   :  { %1329 = vmatpush.msra.mxu3 %v1165_v13  ;;  %1349 = vmatpush.msrb.mxu0 %v1166_v14  ;;  %v1168_v13 = vld [vmem:[#allocation17 + $0x78] sm:$0xff]  ;;  %v1662_v14 = vld [vmem:[%s3145_s17 + $0x20] sm:$0xff] }
 0x2ba   :  { %1120 = vmatpush.msra.mxu1 %v909_v15  ;;  %1140 = vmatpush.msra.mxu2 %v910_v16  ;;  %v1663_v15 = vld [vmem:[%s3145_s17 + $0x28] sm:$0xff] }
 0x2bb   :  { %1330 = vmatpush.msra.mxu3 %v1157_v18  ;;  %1350 = vmatpush.msrb.mxu0 %v1158_v19  ;;  %v1159_v16 = vld [vmem:[#allocation17 + $0x30] sm:$0xff]  ;;  %v1160_v18 = vld [vmem:[#allocation17 + $0x38] sm:$0xff] }
 0x2bc   :  { %1912 = vmatmul.msk.f32.vlgmr.msra.gmra.mxu1 %vm301_vm1, %v2734_v17  ;;  %1913 = vmatmul.msk.f32.vlgmr.msra.gmra.mxu2 %vm301_vm1, %v2734_v17  ;;  %v1659_v19 = vld [vmem:[%s3145_s17 + $0x8] sm:$0xff] }
 0x2bd   :  { %1283 = vmatpush.msrb.mxu1 %v1211_v20  ;;  %1303 = vmatpush.msrb.mxu2 %v1212_v21  ;;  %v1660_v20 = vld [vmem:[%s3145_s17 + $0x10] sm:$0xff]  ;;  %v1586_v21 = vld [vmem:[%s3143_s15 + $0xb8] sm:$0xff] }
 0x2be   :  { %1918 = vmatmul.msk.f32.vlgmr.msra.gmra.mxu3 %vm301_vm1, %v2734_v17  ;;  %1919 = vmatmul.msk.f32.vlgmr.msrb.gmra.mxu0 %vm301_vm1, %v2734_v17 }
 0x2bf   :  { %1603 = vmatpush.msrb.mxu3 %v1584_v22  ;;  %1623 = vmatpush.msra.mxu0 %v1585_v23  ;;  %v1679_v22 = vld [vmem:[%s3145_s17 + $0xa8] sm:$0xff]  ;;  %v1583_v23 = vld [vmem:[%s3143_s15 + $0xa0] sm:$0xff] }
 0x2c0   :  { %1284 = vmatpush.msrb.mxu1 %v1203_v24  ;;  %1304 = vmatpush.msrb.mxu2 %v1204_v25  ;;  %v1676_v24 = vld [vmem:[%s3145_s17 + $0x90] sm:$0xff]  ;;  %v1580_v25 = vld [vmem:[%s3143_s15 + $0x88] sm:$0xff] }
 0x2c1   :  { %1604 = vmatpush.msrb.mxu3 %v1581_v26  ;;  %1624 = vmatpush.msra.mxu0 %v1582_v27  ;;  %v1673_v26 = vld [vmem:[%s3145_s17 + $0x78] sm:$0xff]  ;;  %v1577_v27 = vld [vmem:[%s3143_s15 + $0x70] sm:$0xff] }
 0x2c2   :  { %1285 = vmatpush.msrb.mxu1 %v1195_v28  ;;  %1305 = vmatpush.msrb.mxu2 %v1196_v29  ;;  %v1670_v28 = vld [vmem:[%s3145_s17 + $0x60] sm:$0xff]  ;;  %v1574_v29 = vld [vmem:[%s3143_s15 + $0x58] sm:$0xff] }
 0x2c3   :  { %1605 = vmatpush.msrb.mxu3 %v1578_v30  ;;  %1625 = vmatpush.msra.mxu0 %v1579_v31  ;;  %v1667_v30 = vld [vmem:[%s3145_s17 + $0x48] sm:$0xff]  ;;  %v1571_v31 = vld [vmem:[%s3143_s15 + $0x40] sm:$0xff] }
 0x2c4   :  { %1286 = vmatpush.msrb.mxu1 %v1187_v32  ;;  %1306 = vmatpush.msrb.mxu2 %v1188_v33  ;;  %v1664_v32 = vld [vmem:[%s3145_s17 + $0x30] sm:$0xff]  ;;  %v1568_v33 = vld [vmem:[%s3143_s15 + $0x28] sm:$0xff] }
 0x2c5   :  { %1606 = vmatpush.msrb.mxu3 %v1575_v34  ;;  %1626 = vmatpush.msra.mxu0 %v1576_v35  ;;  %v1661_v34 = vld [vmem:[%s3145_s17 + $0x18] sm:$0xff]  ;;  %v1565_v35 = vld [vmem:[%s3143_s15 + $0x10] sm:$0xff]  ;;  %s3174_s15 = sld [smem:[#allocation45_spill]] }
 0x2c6   :  { %1287 = vmatpush.msrb.mxu1 %v1179_v36  ;;  %1307 = vmatpush.msrb.mxu2 %v1180_v37  ;;  %v1658_v36 = vld [vmem:[%s3145_s17] sm:$0xff] }
 0x2c7   :  { %1607 = vmatpush.msrb.mxu3 %v1572_v38  ;;  %1627 = vmatpush.msra.mxu0 %v1573_v39  ;;  %v2947_v37 = vld [vmem:[%s3138_s10] sm:$0xff] }
 0x2c8   :  { %1288 = vmatpush.msrb.mxu1 %v1171_v40  ;;  %1308 = vmatpush.msrb.mxu2 %v1172_v41  ;;  %v529_v38 = vperm.slane %v2947_v37, 5  ;;  %v525_v40 = vperm.slane %v2947_v37, 1 }
 0x2c9   :  { %1608 = vmatpush.msrb.mxu3 %v1569_v42  ;;  %1628 = vmatpush.msra.mxu0 %v1570_v43  ;;  %v2958_v43 = vld [vmem:[%s3138_s10 + $0x8] sm:$0xf]  ;;  %s2472_s10 = smov [#allocation20]  }
 0x2ca   :  { %1289 = vmatpush.msrb.mxu1 %v1163_v44  ;;  %1309 = vmatpush.msrb.mxu2 %v1164_v45  ;;  %v528_v45 = vperm.slane %v2947_v37, 4  ;;  %s1812_s21 = sshll.u32 %s2472_s10, 4  ;;  %s1813_s21 = int_to_ptr.vmem [resolvable:$true] %s1812_s21 }
 0x2cb   :  { %1609 = vmatpush.msrb.mxu3 %v1566_v46  ;;  %1629 = vmatpush.msra.mxu0 %v1567_v47  ;;  %s1858_s17 = sshll.u32 %s3174_s15, 4  ;;  %s1859_s17 = int_to_ptr.hbm [resolvable:$true] %s1858_s17 }
 0x2cc   :  { %1290 = vmatpush.msrb.mxu1 %v1155_v48  ;;  %1310 = vmatpush.msrb.mxu2 %v1156_v49  ;;  %v524_v48 = vperm.slane %v2947_v37, 0 }
 0x2cd   :  { %1610 = vmatpush.msrb.mxu3 %v1563_v50  ;;  %1630 = vmatpush.msra.mxu0 %v1564_v51  ;;  %v533_v50 = vperm.slane %v2958_v43, 1 }
 0x2ce   :  { %1916 = vmatmul.msk.f32.vlgmr.msrb.gmra.mxu1 %vm301_vm1, %v2734_v17  ;;  %1917 = vmatmul.msk.f32.vlgmr.msrb.gmra.mxu2 %vm301_vm1, %v2734_v17 }
 0x2cf   :  { %1363 = vmatpush.msra.mxu1 %v1215_v52  ;;  %1383 = vmatpush.msra.mxu2 %v1216_v53 }
 0x2d0   :  { %1930 = vmatmul.msk.f32.vlgmr.msrb.gmra.mxu3 %vm301_vm1, %v2734_v17  ;;  %1931 = vmatmul.msk.f32.vlgmr.msra.gmra.mxu0 %vm301_vm1, %v2734_v17 }
 0x2d1   :  { %1718 = vmatpush.msra.mxu3 %v1680_v54  ;;  %1738 = vmatpush.msrb.mxu0 %v1681_v55 }
 0x2d2   :  { %1364 = vmatpush.msra.mxu1 %v1207_v56  ;;  %1384 = vmatpush.msra.mxu2 %v1208_v57  ;;  %v532_v57 = vperm.slane %v2958_v43, 0 }
 0x2d3   :  { %1719 = vmatpush.msra.mxu3 %v1677_v58  ;;  %1739 = vmatpush.msrb.mxu0 %v1678_v59 }
 0x2d4   :  { %1365 = vmatpush.msra.mxu1 %v1199_v60  ;;  %1385 = vmatpush.msra.mxu2 %v1200_v61  ;;  %v2966_v60 = vld [vmem:[#allocation16] sm:$0xff] }
 0x2d5   :  { %1720 = vmatpush.msra.mxu3 %v1674_v62  ;;  %1740 = vmatpush.msrb.mxu0 %v1675_v63 }
 0x2d6   :  { %1366 = vmatpush.msra.mxu1 %v1191_v0  ;;  %1386 = vmatpush.msra.mxu2 %v1192_v1 }
 0x2d7   :  { %1721 = vmatpush.msra.mxu3 %v1671_v2  ;;  %1741 = vmatpush.msrb.mxu0 %v1672_v3  ;;  %v970_v2 = vperm.slane %v2966_v60, 1 }
 0x2d8   :  { %1367 = vmatpush.msra.mxu1 %v1183_v4  ;;  %1387 = vmatpush.msra.mxu2 %v1184_v5 }
 0x2d9   :  { %1722 = vmatpush.msra.mxu3 %v1668_v6  ;;  %1742 = vmatpush.msrb.mxu0 %v1669_v7 }
 0x2da   :  { %1368 = vmatpush.msra.mxu1 %v1175_v8  ;;  %1388 = vmatpush.msra.mxu2 %v1176_v9 }
 0x2db   :  { %1723 = vmatpush.msra.mxu3 %v1665_v10  ;;  %1743 = vmatpush.msrb.mxu0 %v1666_v11  ;;  %v526_v10 = vperm.slane %v2947_v37, 2  ;;  %v969_v11 = vperm.slane %v2966_v60, 0 }
 0x2dc   :  { %1369 = vmatpush.msra.mxu1 %v1167_v12  ;;  %1389 = vmatpush.msra.mxu2 %v1168_v13  ;;  %v530_v13 = vperm.slane %v2947_v37, 6 }
 0x2dd   :  { %1724 = vmatpush.msra.mxu3 %v1662_v14  ;;  %1744 = vmatpush.msrb.mxu0 %v1663_v15 }
 0x2de   :  { %1370 = vmatpush.msra.mxu1 %v1159_v16  ;;  %1390 = vmatpush.msra.mxu2 %v1160_v18 }
 0x2df   :  { %1725 = vmatpush.msra.mxu3 %v1659_v19  ;;  %1745 = vmatpush.msrb.mxu0 %v1660_v20  ;;  %v527_v20 = vperm.slane %v2947_v37, 3 }
 0x2e0   :  { %1920 = vmatmul.msk.f32.vlgmr.msra.gmra.mxu1 %vm301_vm1, %v2734_v17  ;;  %1921 = vmatmul.msk.f32.vlgmr.msra.gmra.mxu2 %vm301_vm1, %v2734_v17 }
 0x2e1   :  { %1643 = vmatpush.msrb.mxu1 %v1586_v21  ;;  %1698 = vmatpush.msrb.mxu2 %v1679_v22 }
 0x2e2   :  { %1934 = vmatmul.msk.f32.vlgmr.msra.gmra.mxu3 %vm301_vm1, %v2734_v17  ;;  %1935 = vmatmul.msk.f32.vlgmr.msrb.gmra.mxu0 %vm301_vm1, %v2734_v17 }
 0x2e3   :  { %1644 = vmatpush.msrb.mxu1 %v1583_v23  ;;  %1699 = vmatpush.msrb.mxu2 %v1676_v24 }
 0x2e5   :  { %1645 = vmatpush.msrb.mxu1 %v1580_v25  ;;  %1700 = vmatpush.msrb.mxu2 %v1673_v26  ;;  %v531_v25 = vperm.slane %v2947_v37, 7 }
 0x2e7   :  { %1646 = vmatpush.msrb.mxu1 %v1577_v27  ;;  %1701 = vmatpush.msrb.mxu2 %v1670_v28 }
 0x2e9   :  { %1647 = vmatpush.msrb.mxu1 %v1574_v29  ;;  %1702 = vmatpush.msrb.mxu2 %v1667_v30 }
 0x2eb   :  { %1648 = vmatpush.msrb.mxu1 %v1571_v31  ;;  %1703 = vmatpush.msrb.mxu2 %v1664_v32  ;;  %v534_v32 = vperm.slane %v2958_v43, 2 }
 0x2ed   :  { %1649 = vmatpush.msrb.mxu1 %v1568_v33  ;;  %1704 = vmatpush.msrb.mxu2 %v1661_v34 }
 0x2ef   :  { %1650 = vmatpush.msrb.mxu1 %v1565_v35  ;;  %1705 = vmatpush.msrb.mxu2 %v1658_v36  ;;  %v568_v46 = vpop.f32.mrf.mxu1 }
 0x2f0   :  { %1932 = vmatmul.msk.f32.vlgmr.msrb.gmra.mxu1 %vm301_vm1, %v2734_v17  ;;  %1933 = vmatmul.msk.f32.vlgmr.msrb.gmra.mxu2 %vm301_vm1, %v2734_v17  ;;  %v668_v39 = vpop.f32.mrf.mxu0  ;;  %v569_v53 = vadd.f32 %v568_v46, %v524_v48 }
 0x2f1   :  { %v669_v41 = vadd.f32 %v668_v39, %v529_v38  ;;  %v974_v38 = vperm.slane %v2966_v60, 5 }
 0x2f2   :  { %v791_v59 = vmul.f32 1.442695, %v569_v53 }
 0x2f3   :  { %v801_v17 = vmul.f32 1.442695, %v669_v41  ;;  %v535_v41 = vperm.slane %v2958_v43, 3 }
 0x2f5   :  { %v588_v42 = vpop.f32.mrf.mxu2 }
 0x2f6   :  { %v589_v44 = vadd.f32 %v588_v42, %v525_v40  ;;  %v648_v47 = vpop.f32.mrf.mxu3 }
 0x2f7   :  { %v649_v51 = vadd.f32 %v648_v47, %v528_v45 }
 0x2f8   :  { %v793_v49 = vmul.f32 1.442695, %v589_v44 }
 0x2f9   :  { %v799_v55 = vmul.f32 1.442695, %v649_v51  ;;  %v608_v61 = vpop.f32.mrf.mxu1 }
 0x2fa   :  { %1975 = vpow2.f32 %v793_v49  ;;  %v609_v19 = vadd.f32 %v608_v61, %v526_v10 }
 0x2fb   :  { %v748_v52 = vpop.f32.mrf.mxu0  ;;  %1977 = vpow2.f32 %v801_v17  ;;  %v973_v17 = vperm.slane %v2966_v60, 4 }
 0x2fc   :  { %v749_v54 = vadd.f32 %v748_v52, %v533_v50  ;;  %v795_v28 = vmul.f32 1.442695, %v609_v19  ;;  %v3018_v19 = vld [vmem:[#allocation19] sm:$0xff] }
 0x2fe   :  { %v809_v56 = vmul.f32 1.442695, %v749_v54 }
 0x2ff   :  { %v628_v5 = vpop.f32.mrf.mxu2 }
 0x300   :  { %v2964_v58 = vpop.eup %1975  ;;  %1979 = vpow2.f32 %v809_v56  ;;  %v629_v29 = vadd.f32 %v628_v5, %v527_v20  ;;  %v1220_v20 = vperm.slane %v3018_v19, 1 }
 0x301   :  { %v728_v62 = vpop.f32.mrf.mxu3  ;;  %v2968_v63 = vpop.eup %1977  ;;  %1981 = vpow2.f32 %v799_v55 }
 0x302   :  { %v729_v0 = vadd.f32 %v728_v62, %v532_v57  ;;  %v816_v1 = vadd.f32 %v2968_v63, %v2964_v58  ;;  %1983 = vpow2.f32 %v791_v59  ;;  %v797_v37 = vmul.f32 1.442695, %v629_v29 }
 0x304   :  { %v807_v3 = vmul.f32 1.442695, %v729_v0 }
 0x305   :  { %v688_v15 = vpop.f32.mrf.mxu1 }
 0x306   :  { %v2973_v4 = vpop.eup %1979  ;;  %1985 = vpow2.f32 %v807_v3  ;;  %v1022_v6 = vpop.f32.mrf.mxu0  ;;  %v689_v23 = vadd.f32 %v688_v15, %v530_v13 }
 0x307   :  { %v820_v7 = vadd.f32 %v2973_v4, %v816_v1  ;;  %v1023_v8 = vadd.f32 %v1022_v6, %v970_v2  ;;  %v2976_v9 = vpop.eup %1981 }
 0x308   :  { %v2980_v12 = vpop.eup %1983  ;;  %v803_v31 = vmul.f32 1.442695, %v689_v23 }
 0x309   :  { %1987 = vrcp.f32 %v820_v7  ;;  %1146 = vst [vmem:[#allocation21 + $0x8] sm:$0xff] %v1023_v8  ;;  %v815_v14 = vadd.f32 %v2980_v12, %v2976_v9  ;;  %v846_v33 = vand.u32 2147483647, %v820_v7  ;;  %v848_v34 = vand.u32 2147483648, %v820_v7 }
 0x30a   :  { %vm842_vm3 = vweird.f32 %v820_v7 }
 0x30b   :  { %v708_v27 = vpop.f32.mrf.mxu2  ;;  %vm847_vm5 = vcmp.eq.f32.partialorder %v846_v33, 8.507059e+37  ;;  %v849_v46 = vor.u32 1.1754944e-38, %v848_v34 }
 0x30c   :  { %v2985_v16 = vpop.eup %1985  ;;  %v1002_v18 = vpop.f32.mrf.mxu3  ;;  %v709_v35 = vadd.f32 %v708_v27, %v531_v25  ;;  %v972_v27 = vperm.slane %v2966_v60, 3 }
 0x30d   :  { %v2989_v21 = vadd.f32 %v2985_v16, %v815_v14  ;;  %v1003_v22 = vadd.f32 %v1002_v18, %v969_v11 }
 0x30e   :  { %v805_v47 = vmul.f32 1.442695, %v709_v35 }
 0x30f   :  { %v1988_v24 = vpop.eup %1987  ;;  %1989 = vrcp.f32 %v2989_v21  ;;  %1145 = vst [vmem:[#allocation21] sm:$0xff] %v1003_v22  ;;  %v832_v43 = vand.u32 2147483647, %v2989_v21  ;;  %v834_v54 = vand.u32 2147483648, %v2989_v21  ;;  %vm828_vm7 = vweird.f32 %v2989_v21 }
 0x310   :  { %v838_v26 = vmul.f32 %v1988_v24, %v820_v7  ;;  %vm843_vm2 = vweird.f32 %v1988_v24  ;;  %1991 = vpow2.f32 %v795_v28 }
 0x311   :  { %1993 = vpow2.f32 %v803_v31  ;;  %vm844_vm4 = vmor %vm842_vm3, %vm843_vm2  ;;  %vm833_vm9 = vcmp.eq.f32.partialorder %v832_v43, 8.507059e+37 }
 0x312   :  { %v839_v30 = vsub.f32 1.0, %v838_v26 }
 0x314   :  { %v840_v36 = vmul.f32 %v1988_v24, %v839_v30  ;;  %v1219_v30 = vperm.slane %v3018_v19, 0 }
 0x315   :  { %v1990_v39 = vpop.eup %1989  ;;  %v768_v40 = vpop.f32.mrf.mxu1 }
 0x316   :  { %v841_v42 = vadd.f32 %v1988_v24, %v840_v36  ;;  %v824_v44 = vmul.f32 %v1990_v39, %v2989_v21  ;;  %v769_v45 = vadd.f32 %v768_v40, %v534_v32  ;;  %vm829_vm6 = vweird.f32 %v1990_v39  ;;  %v3003_v61 = vpop.eup %1991 }
 0x317   :  { %v1102_v48 = vpop.f32.mrf.mxu0  ;;  %v3005_v0 = vpop.eup %1993  ;;  %vm830_vm8 = vmor %vm828_vm7, %vm829_vm6 }
 0x318   :  { %v845_v49 = vsel %vm844_vm4, %v1988_v24, %v841_v42  ;;  %v825_v50 = vsub.f32 1.0, %v824_v44  ;;  %v811_v51 = vmul.f32 1.442695, %v769_v45  ;;  %v1103_v52 = vadd.f32 %v1102_v48, %v974_v38 }
 0x319   :  { %v850_v53 = vsel %vm847_vm5, %v849_v46, %v845_v49  ;;  %v817_v7 = vadd.f32 %v3005_v0, %v3003_v61 }
 0x31a   :  { %v880_v55 = vmul.f32 %v2964_v58, %v850_v53  ;;  %v888_v56 = vmul.f32 %v2968_v63, %v850_v53  ;;  %v896_v57 = vmul.f32 %v2973_v4, %v850_v53  ;;  %v826_v59 = vmul.f32 %v1990_v39, %v825_v50  ;;  %1150 = vst [vmem:[#allocation21 + $0x28] sm:$0xff] %v1103_v52 }
 0x31b   :  { %1995 = vpow2.f32 %v811_v51  ;;  %v788_v62 = vpop.f32.mrf.mxu2  ;;  %v835_v58 = vor.u32 1.1754944e-38, %v834_v54 }
 0x31c   :  { %884 = vst [vmem:[#allocation20 + $0x8] sm:$0xff] %v880_v55  ;;  %v827_v1 = vadd.f32 %v1990_v39, %v826_v59  ;;  %1997 = vpow2.f32 %v805_v47  ;;  %v789_v2 = vadd.f32 %v788_v62, %v535_v41  ;;  %v1224_v59 = vperm.slane %v3018_v19, 5 }
 0x31d   :  { %892 = vst [vmem:[#allocation20 + $0x28] sm:$0xff] %v888_v56  ;;  %1999 = vpow2.f32 %v797_v37  ;;  %v1082_v63 = vpop.f32.mrf.mxu3  ;;  %v975_v56 = vperm.slane %v2966_v60, 6 }
 0x31e   :  { %900 = vst [vmem:[#allocation20 + $0x48] sm:$0xff] %v896_v57  ;;  %v831_v3 = vsel %vm830_vm8, %v1990_v39, %v827_v1  ;;  %v813_v4 = vmul.f32 1.442695, %v789_v2  ;;  %v1083_v5 = vadd.f32 %v1082_v63, %v973_v17 }
 0x31f   :  { %v836_v6 = vsel %vm833_vm9, %v835_v58, %v831_v3 }
 0x320   :  { %v879_v8 = vmul.f32 %v2980_v12, %v836_v6  ;;  %v887_v10 = vmul.f32 %v2976_v9, %v836_v6  ;;  %v895_v11 = vmul.f32 %v2985_v16, %v836_v6  ;;  %2001 = vpow2.f32 %v813_v4  ;;  %1149 = vst [vmem:[#allocation21 + $0x20] sm:$0xff] %v1083_v5 }
 0x321   :  { %v1996_v13 = vpop.eup %1995  ;;  %v971_v12 = vperm.slane %v2966_v60, 2  ;;  %v976_v6 = vperm.slane %v2966_v60, 7 }
 0x322   :  { %v3014_v14 = vpop.eup %1997  ;;  %883 = vst [vmem:[#allocation20] sm:$0xff] %v879_v8  ;;  %v821_v15 = vadd.f32 %v1996_v13, %v817_v7 }
 0x323   :  { %v3016_v18 = vpop.eup %1999  ;;  %891 = vst [vmem:[#allocation20 + $0x20] sm:$0xff] %v887_v10 }
 0x324   :  { %899 = vst [vmem:[#allocation20 + $0x40] sm:$0xff] %v895_v11  ;;  %2003 = vrcp.f32 %v821_v15  ;;  %v818_v9 = vadd.f32 %v3016_v18, %v3014_v14  ;;  %v862_v33 = vand.u32 2147483648, %v821_v15  ;;  %v860_v38 = vand.u32 2147483647, %v821_v15 }
 0x325   :  { %vm856_vm11 = vweird.f32 %v821_v15  ;;  %v1223_v11 = vperm.slane %v3018_v19, 4 }
 0x326   :  { %v3023_v16 = vpop.eup %2001  ;;  %v863_v42 = vor.u32 1.1754944e-38, %v862_v33  ;;  %vm861_vm13 = vcmp.eq.f32.partialorder %v860_v38, 8.507059e+37 }
 0x327   :  { %v822_v21 = vadd.f32 %v3023_v16, %v818_v9  ;;  %v1042_v22 = vpop.f32.mrf.mxu1 }
 0x328   :  { %v1043_v23 = vadd.f32 %v1042_v22, %v971_v12 }
 0x329   :  { %2005 = vrcp.f32 %v822_v21  ;;  %v1272_v24 = vpop.f32.mrf.mxu0  ;;  %v874_v47 = vand.u32 2147483647, %v822_v21  ;;  %v876_v48 = vand.u32 2147483648, %v822_v21  ;;  %vm870_vm15 = vweird.f32 %v822_v21 }
 0x32a   :  { %v2004_v25 = vpop.eup %2003  ;;  %1147 = vst [vmem:[#allocation21 + $0x10] sm:$0xff] %v1043_v23  ;;  %v1273_v26 = vadd.f32 %v1272_v24, %v1220_v20 }
 0x32b   :  { %v852_v28 = vmul.f32 %v2004_v25, %v821_v15  ;;  %vm857_vm10 = vweird.f32 %v2004_v25  ;;  %v877_v55 = vor.u32 1.1754944e-38, %v876_v48  ;;  %vm875_vm1 = vcmp.eq.f32.partialorder %v874_v47, 8.507059e+37 }
 0x32c   :  { %v1923_v29 = vmul.f32 -1.442695, %v1273_v26  ;;  %vm858_vm12 = vmor %vm856_vm11, %vm857_vm10 }
 0x32d   :  { %v853_v31 = vsub.f32 1.0, %v852_v28  ;;  %v1062_v32 = vpop.f32.mrf.mxu2 }
 0x32e   :  { %2007 = vpow2.f32 %v1923_v29  ;;  %v1063_v34 = vadd.f32 %v1062_v32, %v972_v27  ;;  %v3060_v32 = vld [vmem:[%s3144_s16] sm:$0x7] }
 0x32f   :  { %v2006_v35 = vpop.eup %2005  ;;  %v854_v36 = vmul.f32 %v2004_v25, %v853_v31  ;;  %v1252_v39 = vpop.f32.mrf.mxu3  ;;  %v1221_v31 = vperm.slane %v3018_v19, 2  ;;  %v1590_v38 = vperm.slane %v3060_v32, 1 }
 0x330   :  { %v866_v37 = vmul.f32 %v2006_v35, %v822_v21  ;;  %1148 = vst [vmem:[#allocation21 + $0x18] sm:$0xff] %v1063_v34  ;;  %v1253_v40 = vadd.f32 %v1252_v39, %v1219_v30  ;;  %vm871_vm14 = vweird.f32 %v2006_v35 }
 0x331   :  { %v855_v41 = vadd.f32 %v2004_v25, %v854_v36  ;;  %vm872_vm0 = vmor %vm870_vm15, %vm871_vm14 }
 0x332   :  { %v867_v44 = vsub.f32 1.0, %v866_v37  ;;  %v1922_v45 = vmul.f32 -1.442695, %v1253_v40 }
 0x333   :  { %v859_v46 = vsel %vm858_vm12, %v2004_v25, %v855_v41 }
 0x334   :  { %v2008_v17 = vpop.eup %2007  ;;  %v864_v49 = vsel %vm861_vm13, %v863_v42, %v859_v46  ;;  %v868_v50 = vmul.f32 %v2006_v35, %v867_v44  ;;  %2009 = vpow2.f32 %v1922_v45 }
 0x335   :  { %v881_v51 = vmul.f32 %v3003_v61, %v864_v49  ;;  %v889_v52 = vmul.f32 %v3005_v0, %v864_v49  ;;  %v897_v53 = vmul.f32 %v1996_v13, %v864_v49  ;;  %v3031_v43 = vadd.f32 1.0, %v2008_v17 }
 0x336   :  { %v869_v54 = vadd.f32 %v2006_v35, %v868_v50  ;;  %v1222_v49 = vperm.slane %v3018_v19, 3 }
 0x337   :  { %885 = vst [vmem:[#allocation20 + $0x10] sm:$0xff] %v881_v51  ;;  %2011 = vrcp.f32 %v3031_v43  ;;  %v1453_v15 = vand.u32 2147483648, %v3031_v43  ;;  %v1451_v9 = vand.u32 2147483647, %v3031_v43  ;;  %vm1447_vm3 = vweird.f32 %v3031_v43 }
 0x338   :  { %893 = vst [vmem:[#allocation20 + $0x30] sm:$0xff] %v889_v52  ;;  %v873_v57 = vsel %vm872_vm0, %v2006_v35, %v869_v54  ;;  %v1589_v52 = vperm.slane %v3060_v32, 0 }
 0x339   :  { %901 = vst [vmem:[#allocation20 + $0x50] sm:$0xff] %v897_v53  ;;  %v878_v61 = vsel %vm875_vm1, %v877_v55, %v873_v57  ;;  %v1122_v62 = vpop.f32.mrf.mxu1  ;;  %v1454_v24 = vor.u32 1.1754944e-38, %v1453_v15  ;;  %vm1452_vm5 = vcmp.eq.f32.partialorder %v1451_v9, 8.507059e+37 }
 0x33a   :  { %v2010_v0 = vpop.eup %2009  ;;  %v882_v1 = vmul.f32 %v3016_v18, %v878_v61  ;;  %v890_v2 = vmul.f32 %v3014_v14, %v878_v61  ;;  %v898_v58 = vmul.f32 %v3023_v16, %v878_v61  ;;  %v1123_v3 = vadd.f32 %v1122_v62, %v975_v56 }
 0x33b   :  { %v3042_v63 = vadd.f32 1.0, %v2010_v0  ;;  %v1352_v4 = vpop.f32.mrf.mxu0 }
 0x33c   :  { %886 = vst [vmem:[#allocation20 + $0x18] sm:$0xff] %v882_v1  ;;  %v1353_v5 = vadd.f32 %v1352_v4, %v1224_v59 }
 0x33d   :  { %v2012_v7 = vpop.eup %2011  ;;  %894 = vst [vmem:[#allocation20 + $0x38] sm:$0xff] %v890_v2  ;;  %2013 = vrcp.f32 %v3042_v63  ;;  %v1438_v29 = vand.u32 2147483648, %v3042_v63  ;;  %v1436_v35 = vand.u32 2147483647, %v3042_v63  ;;  %vm1432_vm7 = vweird.f32 %v3042_v63 }
 0x33e   :  { %902 = vst [vmem:[#allocation20 + $0x58] sm:$0xff] %v898_v58  ;;  %v1443_v8 = vmul.f32 %v2012_v7, %v3031_v43  ;;  %v1927_v10 = vmul.f32 -1.442695, %v1353_v5  ;;  %vm1448_vm2 = vweird.f32 %v2012_v7 }
 0x33f   :  { %1151 = vst [vmem:[#allocation21 + $0x30] sm:$0xff] %v1123_v3  ;;  %v1142_v60 = vpop.f32.mrf.mxu2  ;;  %1817 = dma.vmem_to_hbm [thread:$0]  %s1813_s21, 1536, %s1815_s4, [#allocation4]   ;;  %vm1449_vm4 = vmor %vm1447_vm3, %vm1448_vm2  ;;  %v1439_v39 = vor.u32 1.1754944e-38, %v1438_v29  ;;  %vm1437_vm9 = vcmp.eq.f32.partialorder %v1436_v35, 8.507059e+37 }
 0x340   :  { %v1444_v13 = vsub.f32 1.0, %v1443_v8  ;;  %2015 = vpow2.f32 %v1927_v10  ;;  %v1143_v14 = vadd.f32 %v1142_v60, %v976_v6  ;;  %v1225_v8 = vperm.slane %v3018_v19, 6 }
 0x341   :  { %v1332_v18 = vpop.f32.mrf.mxu3 }
 0x342   :  { %v1445_v12 = vmul.f32 %v2012_v7, %v1444_v13  ;;  %1152 = vst [vmem:[#allocation21 + $0x38] sm:$0xff] %v1143_v14  ;;  %v1333_v16 = vadd.f32 %v1332_v18, %v1223_v11  ;;  %v3071_v13 = vld [vmem:[%s3146_s18] sm:$0x7]  ;;  %s2474_s18 = smov [#allocation24]  }
 0x343   :  { %v2014_v20 = vpop.eup %2013  ;;  %1828 = dma.vmem_to_hbm [thread:$0]  %s1824_s30, 1024, %s1826_s26, [#allocation22]  }
 0x344   :  { %v1446_v21 = vadd.f32 %v2012_v7, %v1445_v12  ;;  %v1428_v22 = vmul.f32 %v2014_v20, %v3042_v63  ;;  %v1926_v23 = vmul.f32 -1.442695, %v1333_v16  ;;  %vm1433_vm6 = vweird.f32 %v2014_v20  ;;  %s1845_s9 = sshll.u32 %s2474_s18, 4  ;;  %s1846_s9 = int_to_ptr.vmem [resolvable:$true] %s1845_s9 }
 0x345   :  { %vm1434_vm8 = vmor %vm1432_vm7, %vm1433_vm6  ;;  %v1686_v16 = vperm.slane %v3071_v13, 2 }
 0x346   :  { %v2016_v25 = vpop.eup %2015  ;;  %v1450_v26 = vsel %vm1449_vm4, %v2012_v7, %v1446_v21  ;;  %v1429_v27 = vsub.f32 1.0, %v1428_v22  ;;  %2017 = vpow2.f32 %v1926_v23 }
 0x347   :  { %v1455_v28 = vsel %vm1452_vm5, %v1454_v24, %v1450_v26  ;;  %v1424_v30 = vadd.f32 1.0, %v2016_v25 }
 0x348   :  { %v1548_v33 = vmul.f32 0.8, %v1455_v28  ;;  %v1430_v34 = vmul.f32 %v2014_v20, %v1429_v27  ;;  %v1226_v27 = vperm.slane %v3018_v19, 7  ;;  %v1591_v19 = vperm.slane %v3060_v32, 2 }
 0x349   :  { %2019 = vrcp.f32 %v1424_v30  ;;  %v1511_v55 = vand.u32 2147483647, %v1424_v30  ;;  %v1513_v56 = vand.u32 2147483648, %v1424_v30  ;;  %vm1507_vm11 = vweird.f32 %v1424_v30 }
 0x34a   :  { %1556 = vst [vmem:[#allocation23 + $0x8] sm:$0xff] %v1548_v33  ;;  %v1431_v36 = vadd.f32 %v2014_v20, %v1430_v34 }
 0x34b   :  { %v1292_v37 = vpop.f32.mrf.mxu1  ;;  %v1514_v63 = vor.u32 1.1754944e-38, %v1513_v56  ;;  %vm1512_vm13 = vcmp.eq.f32.partialorder %v1511_v55, 8.507059e+37 }
 0x34c   :  { %v2018_v40 = vpop.eup %2017  ;;  %v1435_v41 = vsel %vm1434_vm8, %v2014_v20, %v1431_v36  ;;  %v1293_v42 = vadd.f32 %v1292_v37, %v1221_v31  ;;  %v1685_v31 = vperm.slane %v3071_v13, 1 }
 0x34d   :  { %v1440_v44 = vsel %vm1437_vm9, %v1439_v39, %v1435_v41  ;;  %v1423_v45 = vadd.f32 1.0, %v2018_v40  ;;  %v1632_v46 = vpop.f32.mrf.mxu0 }
 0x34e   :  { %v1547_v47 = vmul.f32 0.8, %v1440_v44  ;;  %v1924_v48 = vmul.f32 -1.442695, %v1293_v42  ;;  %v1633_v17 = vadd.f32 %v1632_v46, %v1590_v38 }
 0x34f   :  { %v2020_v50 = vpop.eup %2019  ;;  %2021 = vrcp.f32 %v1423_v45  ;;  %v1498_v7 = vand.u32 2147483648, %v1423_v45  ;;  %v1496_v60 = vand.u32 2147483647, %v1423_v45  ;;  %vm1492_vm15 = vweird.f32 %v1423_v45 }
 0x350   :  { %1555 = vst [vmem:[#allocation23] sm:$0xff] %v1547_v47  ;;  %v1503_v51 = vmul.f32 %v2020_v50, %v1424_v30  ;;  %2023 = vpow2.f32 %v1924_v48  ;;  %vm1508_vm10 = vweird.f32 %v2020_v50 }
 0x351   :  { %1656 = vst [vmem:[#allocation24 + $0x8] sm:$0xff] %v1633_v17  ;;  %v1312_v53 = vpop.f32.mrf.mxu2  ;;  %vm1509_vm12 = vmor %vm1507_vm11, %vm1508_vm10  ;;  %v1499_v18 = vor.u32 1.1754944e-38, %v1498_v7  ;;  %vm1497_vm1 = vcmp.eq.f32.partialorder %v1496_v60, 8.507059e+37 }
 0x352   :  { %v1504_v43 = vsub.f32 1.0, %v1503_v51  ;;  %v1313_v54 = vadd.f32 %v1312_v53, %v1222_v49 }
 0x353   :  { %v1612_v57 = vpop.f32.mrf.mxu3 }
 0x354   :  { %v1505_v59 = vmul.f32 %v2020_v50, %v1504_v43  ;;  %v1925_v61 = vmul.f32 -1.442695, %v1313_v54  ;;  %v1613_v62 = vadd.f32 %v1612_v57, %v1589_v52 }
 0x355   :  { %v2022_v0 = vpop.eup %2021 }
 0x356   :  { %v2024_v1 = vpop.eup %2023  ;;  %v1506_v2 = vadd.f32 %v2020_v50, %v1505_v59  ;;  %v1488_v58 = vmul.f32 %v2022_v0, %v1423_v45  ;;  %2025 = vpow2.f32 %v1925_v61  ;;  %1655 = vst [vmem:[#allocation24] sm:$0xff] %v1613_v62  ;;  %vm1493_vm14 = vweird.f32 %v2022_v0 }
 0x357   :  { %v1421_v3 = vadd.f32 1.0, %v2024_v1  ;;  %vm1494_vm0 = vmor %vm1492_vm15, %vm1493_vm14 }
 0x358   :  { %v1510_v4 = vsel %vm1509_vm12, %v2020_v50, %v1506_v2  ;;  %v1489_v5 = vsub.f32 1.0, %v1488_v58 }
 0x359   :  { %v1515_v6 = vsel %vm1512_vm13, %v1514_v63, %v1510_v4  ;;  %2027 = vrcp.f32 %v1421_v3  ;;  %v1466_v33 = vand.u32 2147483647, %v1421_v3  ;;  %v1468_v34 = vand.u32 2147483648, %v1421_v3 }
 0x35a   :  { %v1552_v10 = vmul.f32 0.8, %v1515_v6  ;;  %v1490_v11 = vmul.f32 %v2022_v0, %v1489_v5  ;;  %vm1462_vm3 = vweird.f32 %v1421_v3  ;;  %v1684_v6 = vperm.slane %v3071_v13, 0 }
 0x35b   :  { %vm1467_vm5 = vcmp.eq.f32.partialorder %v1466_v33, 8.507059e+37  ;;  %v1469_v46 = vor.u32 1.1754944e-38, %v1468_v34 }
 0x35c   :  { %v2026_v14 = vpop.eup %2025  ;;  %1560 = vst [vmem:[#allocation23 + $0x28] sm:$0xff] %v1552_v10  ;;  %v1491_v15 = vadd.f32 %v2022_v0, %v1490_v11 }
 0x35d   :  { %v3073_v12 = vadd.f32 1.0, %v2026_v14  ;;  %v1372_v9 = vpop.f32.mrf.mxu1 }
 0x35e   :  { %v1495_v20 = vsel %vm1494_vm0, %v2022_v0, %v1491_v15  ;;  %v1373_v21 = vadd.f32 %v1372_v9, %v1225_v8 }
 0x35f   :  { %v2028_v22 = vpop.eup %2027  ;;  %v1500_v23 = vsel %vm1497_vm1, %v1499_v18, %v1495_v20  ;;  %2029 = vrcp.f32 %v3073_v12  ;;  %v1747_v24 = vpop.f32.mrf.mxu0  ;;  %v1481_v50 = vand.u32 2147483647, %v3073_v12  ;;  %v1483_v32 = vand.u32 2147483648, %v3073_v12 }
 0x360   :  { %v1551_v25 = vmul.f32 0.8, %v1500_v23  ;;  %v1458_v26 = vmul.f32 %v2028_v22, %v1421_v3  ;;  %v1928_v28 = vmul.f32 -1.442695, %v1373_v21  ;;  %v3078_v29 = vadd.f32 %v1747_v24, %v1686_v16 }
 0x361   :  { %vm1463_vm2 = vweird.f32 %v2028_v22  ;;  %vm1477_vm7 = vweird.f32 %v3073_v12  ;;  %v1484_v57 = vor.u32 1.1754944e-38, %v1483_v32  ;;  %vm1482_vm9 = vcmp.eq.f32.partialorder %v1481_v50, 8.507059e+37 }
 0x362   :  { %1559 = vst [vmem:[#allocation23 + $0x20] sm:$0xff] %v1551_v25  ;;  %v1459_v30 = vsub.f32 1.0, %v1458_v26  ;;  %2031 = vpow2.f32 %v1928_v28  ;;  %v1761_v35 = vand.u32 2147483647, %v3078_v29  ;;  %vm1464_vm4 = vmor %vm1462_vm3, %vm1463_vm2  ;;  %v1752_v21 = vmax.f32 %v3078_v29, 0.0 }
 0x363   :  { %v1392_v36 = vpop.f32.mrf.mxu2  ;;  %vm1755_vm0 = vcmp.ne.f32.partialorder %v3078_v29, %v3078_v29 }
 0x364   :  { %v1460_v38 = vmul.f32 %v2028_v22, %v1459_v30  ;;  %v1393_v39 = vadd.f32 %v1392_v36, %v1226_v27  ;;  %v1764_v40 = vsub.f32 0.0, %v1761_v35 }
 0x365   :  { %v2030_v37 = vpop.eup %2029  ;;  %v1727_v41 = vpop.f32.mrf.mxu3 }
 0x366   :  { %v1461_v42 = vadd.f32 %v2028_v22, %v1460_v38  ;;  %v1473_v44 = vmul.f32 %v2030_v37, %v3073_v12  ;;  %v1929_v45 = vmul.f32 -1.442695, %v1393_v39  ;;  %v1769_v47 = vmul.f32 1.442695, %v1764_v40 }
 0x367   :  { %v3084_v48 = vadd.f32 %v1727_v41, %v1685_v31  ;;  %vm1478_vm6 = vweird.f32 %v2030_v37 }
 0x368   :  { %v1465_v17 = vsel %vm1464_vm4, %v2028_v22, %v1461_v42  ;;  %v1474_v49 = vsub.f32 1.0, %v1473_v44  ;;  %2033 = vpow2.f32 %v1929_v45  ;;  %v2032_v51 = vpop.eup %2031  ;;  %vm1479_vm8 = vmor %vm1477_vm7, %vm1478_vm6 }
 0x369   :  { %v1470_v52 = vsel %vm1467_vm5, %v1469_v46, %v1465_v17  ;;  %2035 = vpow2.f32 %v1769_v47  ;;  %v1425_v54 = vadd.f32 1.0, %v2032_v51  ;;  %v1760_v55 = vand.u32 2147483647, %v3084_v48 }
 0x36a   :  { %v1549_v53 = vmul.f32 0.8, %v1470_v52  ;;  %v1475_v43 = vmul.f32 %v2030_v37, %v1474_v49  ;;  %vm1754_vm5 = vcmp.ne.f32.partialorder %v3084_v48, %v3084_v48 }
 0x36b   :  { %2037 = vrcp.f32 %v1425_v54  ;;  %v1763_v59 = vsub.f32 0.0, %v1760_v55  ;;  %v1526_v60 = vand.u32 2147483647, %v1425_v54  ;;  %v1528_v14 = vand.u32 2147483648, %v1425_v54 }
 0x36c   :  { %1557 = vst [vmem:[#allocation23 + $0x10] sm:$0xff] %v1549_v53  ;;  %v1476_v56 = vadd.f32 %v2030_v37, %v1475_v43  ;;  %vm1522_vm10 = vweird.f32 %v1425_v54 }
 0x36d   :  { %v1652_v61 = vpop.f32.mrf.mxu1  ;;  %v1767_v5 = vmul.f32 1.442695, %v1763_v59  ;;  %vm3101_vm12 = vcmp.eq.f32.partialorder %v1526_v60, 8.507059e+37  ;;  %v1529_v24 = vor.u32 1.1754944e-38, %v1528_v14 }
 0x36e   :  { %v2034_v62 = vpop.eup %2033  ;;  %v1480_v0 = vsel %vm1479_vm8, %v2030_v37, %v1476_v56  ;;  %v1653_v1 = vadd.f32 %v1652_v61, %v1591_v19 }
 0x36f   :  { %v2036_v2 = vpop.eup %2035  ;;  %v1485_v58 = vsel %vm1482_vm9, %v1484_v57, %v1480_v0  ;;  %v3093_v63 = vadd.f32 1.0, %v2034_v62 }
 0x370   :  { %v1550_v3 = vmul.f32 0.8, %v1485_v58  ;;  %v1789_v4 = vadd.f32 1.0, %v2036_v2  ;;  %v1792_v7 = vmul.f32 -0.5, %v2036_v2  ;;  %1657 = vst [vmem:[#allocation24 + $0x10] sm:$0xff] %v1653_v1 }
 0x371   :  { %2039 = vrcp.f32 %v3093_v63  ;;  %v2038_v8 = vpop.eup %2037  ;;  %1850 = dma.vmem_to_hbm [thread:$0]  %s1846_s9, 384, %s1848_s12, [#allocation25]   ;;  %v1795_v9 = vand.u32 2147483647, %v2036_v2  ;;  %v1541_v31 = vand.u32 2147483647, %v3093_v63  ;;  %vm1537_vm1 = vweird.f32 %v3093_v63 }
 0x372   :  { %1558 = vst [vmem:[#allocation23 + $0x18] sm:$0xff] %v1550_v3  ;;  %2041 = vlog2.f32 %v1789_v4  ;;  %v1518_v10 = vmul.f32 %v2038_v8, %v1425_v54  ;;  %v1793_v12 = vadd.f32 1.0, %v1792_v7  ;;  %vm1523_vm11 = vweird.f32 %v2038_v8 }
 0x373   :  { %v1707_v11 = vpop.f32.mrf.mxu2  ;;  %2043 = vpow2.f32 %v1767_v5  ;;  %vm1524_vm13 = vmor %vm1522_vm10, %vm1523_vm11  ;;  %vm1796_vm14 = vcmp.lt.f32.partialorder %v1795_v9, 0.0004427343  ;;  %v1543_v35 = vand.u32 2147483648, %v3093_v63  ;;  %vm1542_vm3 = vcmp.eq.f32.partialorder %v1541_v31, 8.507059e+37 }
 0x374   :  { %v3097_v15 = vadd.f32 %v1707_v11, %v1684_v6  ;;  %v1519_v18 = vsub.f32 1.0, %v1518_v10  ;;  %v1794_v30 = vmul.f32 %v2036_v2, %v1793_v12  ;;  %v1751_v54 = vmax.f32 %v3084_v48, 0.0 }
 0x375   :  { %v1544_v47 = vor.u32 1.1754944e-38, %v1543_v35 }
 0x376   :  { %v1759_v13 = vand.u32 2147483647, %v3097_v15  ;;  %v1520_v20 = vmul.f32 %v2038_v8, %v1519_v18  ;;  %vm1753_vm7 = vcmp.ne.f32.partialorder %v3097_v15, %v3097_v15 }
 0x377   :  { %v2040_v16 = vpop.eup %2039 }
 0x378   :  { %v2042_v22 = vpop.eup %2041  ;;  %v1533_v25 = vmul.f32 %v2040_v16, %v3093_v63  ;;  %v1762_v26 = vsub.f32 0.0, %v1759_v13  ;;  %v1521_v27 = vadd.f32 %v2038_v8, %v1520_v20  ;;  %vm1538_vm15 = vweird.f32 %v2040_v16 }
 0x379   :  { %v1791_v28 = vmul.f32 0.6931472, %v2042_v22  ;;  %v2044_v33 = vpop.eup %2043  ;;  %vm1539_vm2 = vmor %vm1537_vm1, %vm1538_vm15  ;;  %v1750_v63 = vmax.f32 %v3097_v15, 0.0 }
 0x37a   :  { %v1534_v34 = vsub.f32 1.0, %v1533_v25  ;;  %v1765_v36 = vmul.f32 1.442695, %v1762_v26  ;;  %v1525_v38 = vsel %vm1524_vm13, %v2038_v8, %v1521_v27  ;;  %v1780_v37 = vadd.f32 1.0, %v2044_v33 }
 0x37b   :  { %v1797_v39 = vsel %vm1796_vm14, %v1794_v30, %v1791_v28  ;;  %v1530_v40 = vsel %vm3101_vm12, %v1529_v24, %v1525_v38  ;;  %v1783_v42 = vmul.f32 -0.5, %v2044_v33  ;;  %v1786_v51 = vand.u32 2147483647, %v2044_v33 }
 0x37c   :  { %v1800_v41 = vadd.f32 %v1797_v39, %v1752_v21  ;;  %v1535_v19 = vmul.f32 %v2040_v16, %v1534_v34  ;;  %v1553_v44 = vmul.f32 0.8, %v1530_v40  ;;  %2045 = vlog2.f32 %v1780_v37 }
 0x37d   :  { %2047 = vpow2.f32 %v1765_v36  ;;  %v1784_v49 = vadd.f32 1.0, %v1783_v42  ;;  %vm1787_vm4 = vcmp.lt.f32.partialorder %v1786_v51, 0.0004427343 }
 0x37e   :  { %v1803_v45 = vsel %vm1755_vm0, %v3078_v29, %v1800_v41  ;;  %v1536_v46 = vadd.f32 %v2040_v16, %v1535_v19  ;;  %1561 = vst [vmem:[#allocation23 + $0x30] sm:$0xff] %v1553_v44 }
 0x37f   :  { %1806 = vst [vmem:[#allocation26 + $0x10] sm:$0xff] %v1803_v45  ;;  %v1785_v43 = vmul.f32 %v2044_v33, %v1784_v49 }
 0x380   :  { %v1540_v17 = vsel %vm1539_vm2, %v2040_v16, %v1536_v46 }
 0x381   :  { %v1545_v50 = vsel %vm1542_vm3, %v1544_v47, %v1540_v17 }
 0x382   :  { %v1554_v29 = vmul.f32 0.8, %v1545_v50  ;;  %v2046_v52 = vpop.eup %2045 }
 0x383   :  { %v2048_v32 = vpop.eup %2047  ;;  %v1782_v53 = vmul.f32 0.6931472, %v2046_v52 }
 0x384   :  { %1562 = vst [vmem:[#allocation23 + $0x38] sm:$0xff] %v1554_v29  ;;  %v1771_v55 = vadd.f32 1.0, %v2048_v32  ;;  %v1774_v57 = vmul.f32 -0.5, %v2048_v32  ;;  %v1777_v0 = vand.u32 2147483647, %v2048_v32 }
 0x385   :  { %1839 = dma.vmem_to_hbm [thread:$0]  %s1835_s14, 1024, %s1837_s2, [#allocation22]   ;;  %v1788_v56 = vsel %vm1787_vm4, %v1785_v43, %v1782_v53 }
 0x386   :  { %v1799_v59 = vadd.f32 %v1788_v56, %v1751_v54  ;;  %2049 = vlog2.f32 %v1771_v55  ;;  %v1775_v62 = vadd.f32 1.0, %v1774_v57  ;;  %vm1778_vm6 = vcmp.lt.f32.partialorder %v1777_v0, 0.0004427343 }
 0x388   :  { %v1802_v61 = vsel %vm1754_vm5, %v3084_v48, %v1799_v59  ;;  %v1776_v58 = vmul.f32 %v2048_v32, %v1775_v62 }
 0x389   :  { %1805 = vst [vmem:[#allocation26 + $0x8] sm:$0xff] %v1802_v61 }
 0x38c   :  { %v2050_v1 = vpop.eup %2049 }
 0x38d   :  { %v1773_v2 = vmul.f32 0.6931472, %v2050_v1 }
 0x38f   :  { %v1779_v3 = vsel %vm1778_vm6, %v1776_v58, %v1773_v2 }
 0x390   :  { %v1798_v4 = vadd.f32 %v1779_v3, %v1750_v63 }
 0x392   :  { %v1801_v48 = vsel %vm1753_vm7, %v3097_v15, %v1798_v4 }
 0x393   :  { %1804 = vst [vmem:[#allocation26] sm:$0xff] %v1801_v48 }
 0x394   :  { %1861 = dma.vmem_to_hbm [thread:$0]  %s1857_s8, 384, %s1859_s17, [#allocation25]  }
 0x395   :  { %2447 = dma.done.wait [#allocation4], 1536  }
 0x396   :  { %2448 = vsyncadd [#allocation4], 4294965760 }
 0x397   :  { %2449 = dma.done.wait [#allocation22], 2048  }
 0x398   :  { %2450 = vsyncadd [#allocation22], 4294965248 }
 0x399   :  { %2451 = dma.done.wait [#allocation25], 768  }
 0x39a   :  { %2452 = vsyncadd [#allocation25], 4294966528 }
 0x39b   :  { %1882 = vsyncpa [#allocation3], 1 }
 0x39c   :  { %1883 = vsyncpa [#allocation6], 1 }
 0x39d   :  { %1884 = vsyncpa [#allocation9], 1 }
 0x39e   :  { %1885 = vsyncpa [#allocation12], 1 }
 0x39f   :  { %1886 = vsyncpa [#allocation15], 1 }
 0x3a0   :  { %1887 = vsyncpa [#allocation18], 1 }
 0x3a1   :  { %1888 = vsyncpa [#allocation4], 1 }
 0x3a2   :  { %1889 = vsyncpa [#allocation22], 1 }
 0x3a3   :  { %1890 = vsyncpa [#allocation25], 1 }

</bundles_post_ra>
